<compile_context>
chip_gen: v7x
topology: tpu7x:2x2x1
jax: 0.10.0
libtpu: 0.0.40
codegen_flags: <defaults>
</compile_context>

<pallas_src>
import functools
import math

import jax
import jax.numpy as jnp
from jax import lax
from jax.experimental import pallas as pl
from jax.experimental.pallas import tpu as pltpu


# ------------------------- configuration (small, lane-dense demo) -------------------
B = 2          # batch
S = 8          # sequence length
D = 128        # model dim ("dim" in the module; 512 in the original) -- lane-dense
H = 4          # heads ("h" in the module; 8 in the original)
DK = D // H    # per-head dim
F = 256        # feed-forward hidden dim (2048 in the original) -- lane-dense
N_LAYERS = 2   # encoder repeats ("N" in the module; 6 in the original)
EPS = 1e-5     # nn.LayerNorm default eps

# MXU operand dtype (accumulation is always f32). Set to jnp.float32 to match
# the PyTorch f32 reference bit-tight; bf16 is the production setting.
MATMUL_DTYPE = jnp.bfloat16


def _cat0(parts):
    return parts[0] if len(parts) == 1 else jnp.concatenate(parts, axis=0)


# --------------------------------- Pallas kernel ------------------------------------
def _encoder_stack_kernel(x_ref, pe_ref, wqkv_ref, bqkv_ref, wo_ref, bo_ref,
                          w1_ref, b1_ref, w2_ref, b2_ref, o_ref,
                          *, n_layers, n_heads, dk, eps, seq_len, bblk):
    """PE-add + the full N-layer encoder stack for `bblk` batch elements."""
    d_model = x_ref.shape[-1]
    rows = bblk * seq_len
    scale = 1.0 / math.sqrt(dk)
    n_elems = float(seq_len * d_model)       # LayerNorm over all non-batch dims

    # Shared weights: DMA'd once per grid step, loaded once, reused by every layer.
    wqkv = wqkv_ref[...]                     # (D, 3D)    bf16
    wo = wo_ref[...]                         # (H, DK, D) bf16
    w1 = w1_ref[...]                         # (D, F)     bf16
    w2 = w2_ref[...]                         # (F, D)     bf16
    f_dim = w1.shape[1]

    # Hoisted bias broadcasts (JAX does not CSE broadcast_in_dim).
    bqkv = jnp.broadcast_to(bqkv_ref[...], (rows, 3 * d_model))
    bo = jnp.broadcast_to(bo_ref[...], (rows, d_model))
    b1 = jnp.broadcast_to(b1_ref[...], (rows, f_dim))
    b2 = jnp.broadcast_to(b2_ref[...], (rows, d_model))

    # Fused positional-encoding add; stack batch rows into one (rows, D) slab
    # so the QKV / FF matmuls get a wider M dim.
    pe = pe_ref[...]
    inter0 = _cat0([x_ref[b] + pe for b in range(bblk)])      # (rows, D) f32

    def full_layer_norm(t):
        # nn.LayerNorm(x.size()[1:]) re-created each iteration => gamma=1,
        # beta=0, normalized over the whole (S, D) slab of one batch element.
        # One-pass statistics: sum and sum-of-squares together (f32).
        s1 = jnp.sum(t)
        s2 = jnp.sum(t * t)
        mu = s1 / n_elems
        var = s2 / n_elems - mu * mu
        return (t - mu) * lax.rsqrt(var + eps)

    def layer(_, inter):
        # ---- fused Q|K|V projection: one wide bf16 MXU matmul on the slab ----
        qkv = jnp.dot(inter.astype(MATMUL_DTYPE), wqkv,
                      preferred_element_type=jnp.float32) + bqkv   # (rows, 3D) f32

        # ---- multi-head self-attention, per batch element (scores must not
        #      mix batch rows). Each head's context goes straight through its
        #      (DK, D) slice of W_o and is accumulated: no concat / relayout.
        attn_parts = []
        for b in range(bblk):
            r0 = b * seq_len
            q_b = qkv[r0:r0 + seq_len, 0 * d_model:1 * d_model]   # 128-lane aligned
            k_b = qkv[r0:r0 + seq_len, 1 * d_model:2 * d_model]
            v_b = qkv[r0:r0 + seq_len, 2 * d_model:3 * d_model]
            attn_b = jnp.zeros((seq_len, d_model), jnp.float32)
            for h in range(n_heads):
                lo = h * dk
                qh = q_b[:, lo:lo + dk].astype(MATMUL_DTYPE)
                kh = k_b[:, lo:lo + dk].astype(MATMUL_DTYPE)
                vh = v_b[:, lo:lo + dk].astype(MATMUL_DTYPE)
                # Contract the last dims directly -- no explicit K transpose.
                s = lax.dot_general(qh, kh, (((1,), (1,)), ((), ())),
                                    preferred_element_type=jnp.float32) * scale
                s = s - jnp.max(s, axis=-1, keepdims=True)
                p = jnp.exp(s)
                p = p * pl.reciprocal(jnp.sum(p, axis=-1, keepdims=True),
                                      approx=True)
                ctx = jnp.dot(p.astype(MATMUL_DTYPE), vh,
                              preferred_element_type=jnp.float32)
                attn_b = attn_b + jnp.dot(ctx.astype(MATMUL_DTYPE), wo[h],
                                          preferred_element_type=jnp.float32)
            attn_parts.append(attn_b)
        a = _cat0(attn_parts) + bo + inter                 # residual 1

        # ---- full-tensor LayerNorm, per batch element ----
        ln1 = _cat0([full_layer_norm(a[b * seq_len:(b + 1) * seq_len, :])
                     for b in range(bblk)])

        # ---- feed-forward on the stacked (rows, D) slab ----
        h1 = jnp.maximum(jnp.dot(ln1.astype(MATMUL_DTYPE), w1,
                                 preferred_element_type=jnp.float32) + b1, 0.0)
        ffo = jnp.dot(h1.astype(MATMUL_DTYPE), w2,
                      preferred_element_type=jnp.float32) + b2

        # ---- residual 2 adds the PRE-LayerNorm sum `a` (as in the PyTorch code)
        y = ffo + a
        return _cat0([full_layer_norm(y[b * seq_len:(b + 1) * seq_len, :])
                      for b in range(bblk)])

    out = lax.fori_loop(0, n_layers, layer, inter0)
    for b in range(bblk):
        o_ref[b] = out[b * seq_len:(b + 1) * seq_len, :]


# ------------------------------- JAX wrapper -----------------------------------------
def _one_batch_per_core():
    """True on chips with 2 TensorCores per chip (v7x): keep grid=(B,) 'parallel'
    so each core owns one batch element. Single-TC chips (v5e/v6e) instead fold
    the whole batch into one grid step (wider matmul M, no per-step overhead)."""
    try:
        kind = jax.devices()[0].device_kind.lower().replace(" ", "")
    except Exception:
        return False
    return ("v7" in kind) or ("tpu7" in kind)


def encoder_forward(x, pe, params, n_layers=N_LAYERS, batch_block=None):
    """x: (B, S, D) f32, pe: (S, D) f32. Returns (B, S, D) f32."""
    Bx, Sx, Dx = x.shape
    wqkv, bqkv, wo, bo, w1, b1, w2, b2 = params
    if batch_block is None:
        batch_block = 1 if _one_batch_per_core() else Bx
    assert Bx % batch_block == 0
    grid = (Bx // batch_block,)

    kernel = functools.partial(
        _encoder_stack_kernel, n_layers=n_layers, n_heads=H, dk=Dx // H,
        eps=EPS, seq_len=Sx, bblk=batch_block)

    def const_spec(arr):
        zeros = (0,) * arr.ndim
        # Weights / PE: same block every grid step (DMA'd once, kept resident).
        # TODO(synk): at production sizes (D=512, F=2048) add
        # pipeline_mode=pl.Buffered(1) here so v7x's 64 MiB VMEM is not spent
        # double-buffering constant weight blocks.
        return pl.BlockSpec(arr.shape, lambda g, z=zeros: z)

    in_specs = [pl.BlockSpec((batch_block, Sx, Dx), lambda g: (g, 0, 0))] + [
        const_spec(p) for p in (pe, wqkv, bqkv, wo, bo, w1, b1, w2, b2)]
    out_spec = pl.BlockSpec((batch_block, Sx, Dx), lambda g: (g, 0, 0))

    return pl.pallas_call(
        kernel,
        out_shape=jax.ShapeDtypeStruct((Bx, Sx, Dx), jnp.float32),
        grid_spec=pltpu.PrefetchScalarGridSpec(
            num_scalar_prefetch=0, grid=grid,
            in_specs=in_specs, out_specs=out_spec),
        compiler_params=pltpu.CompilerParams(
            dimension_semantics=("parallel",),
            vmem_limit_bytes=32 * 1024 * 1024),
    )(x, pe, wqkv, bqkv, wo, bo, w1, b1, w2, b2)


def pack_params(raw):
    """Pack raw f32 per-matrix params into the kernel layout (bf16 weights)."""
    wq, wk, wv, bq, bk, bv, wo_m, bo_v, w1, b1, w2, b2 = raw
    Dm = wq.shape[0]
    wqkv = jnp.concatenate([wq, wk, wv], axis=1).astype(MATMUL_DTYPE)       # (D, 3D)
    bqkv = jnp.concatenate([bq, bk, bv], axis=0).reshape(1, 3 * Dm)         # (1, 3D) f32
    wo_h = wo_m.reshape(H, Dm // H, Dm).astype(MATMUL_DTYPE)                # (H, DK, D)
    bo = bo_v.reshape(1, Dm)                                                # (1, D)  f32
    return (wqkv, bqkv.astype(jnp.float32), wo_h, bo.astype(jnp.float32),
            w1.astype(MATMUL_DTYPE), b1.reshape(1, -1).astype(jnp.float32),
            w2.astype(MATMUL_DTYPE), b2.reshape(1, -1).astype(jnp.float32))


def positional_encoding(seq_len, dim):
    pos = jnp.arange(seq_len, dtype=jnp.float32)[:, None]              # (S, 1)
    i = jnp.arange(dim // 2, dtype=jnp.float32)[None, :]               # (1, D/2)
    angle = pos / jnp.power(10000.0, (2.0 * i) / dim)                  # (S, D/2)
    pe = jnp.zeros((seq_len, dim), dtype=jnp.float32)
    pe = pe.at[:, 0::2].set(jnp.sin(angle))
    pe = pe.at[:, 1::2].set(jnp.cos(angle))
    return pe


# ------------------------------ pure-JAX reference -----------------------------------
def _ref_forward(x, pe, raw, n_layers=N_LAYERS, matmul_dtype=jnp.float32):
    """PyTorch-equivalent forward. matmul_dtype=bf16 reproduces the kernel's
    MXU-operand casting (accumulation stays f32); f32 is the exact module math."""
    wq, wk, wv, bq, bk, bv, wo_m, bo_v, w1, b1, w2, b2 = raw
    Bx, Sx, Dx = x.shape
    dk = Dx // H
    scale = 1.0 / math.sqrt(dk)

    def mm(a, b):
        return jnp.dot(a.astype(matmul_dtype), b.astype(matmul_dtype),
                       preferred_element_type=jnp.float32)

    def full_ln(t):
        mu = jnp.mean(t, axis=(1, 2), keepdims=True)
        var = jnp.mean((t - mu) ** 2, axis=(1, 2), keepdims=True)
        return (t - mu) / jnp.sqrt(var + EPS)

    inter = x + pe[None]
    for _ in range(n_layers):
        q = mm(inter, wq) + bq
        k = mm(inter, wk) + bk
        v = mm(inter, wv) + bv
        qh = q.reshape(Bx, Sx, H, dk).transpose(0, 2, 1, 3)
        kh = k.reshape(Bx, Sx, H, dk).transpose(0, 2, 1, 3)
        vh = v.reshape(Bx, Sx, H, dk).transpose(0, 2, 1, 3)
        s = jnp.einsum('bhqd,bhkd->bhqk', qh.astype(matmul_dtype),
                       kh.astype(matmul_dtype),
                       preferred_element_type=jnp.float32) * scale
        p = jax.nn.softmax(s, axis=-1)
        ctx = jnp.einsum('bhqk,bhkd->bhqd', p.astype(matmul_dtype),
                         vh.astype(matmul_dtype),
                         preferred_element_type=jnp.float32)
        ctx = ctx.transpose(0, 2, 1, 3).reshape(Bx, Sx, Dx)
        attn = mm(ctx, wo_m) + bo_v
        a = attn + inter
        ln1 = full_ln(a)
        ffo = mm(jnp.maximum(mm(ln1, w1) + b1, 0.0), w2) + b2
        inter = full_ln(ffo + a)
    return inter


# --------------------------------------- main ----------------------------------------
if __name__ == "__main__":
    key = jax.random.PRNGKey(0)
    ks = jax.random.split(key, 12)

    def init(k, shape, scale=0.05):
        return (scale * jax.random.normal(k, shape)).astype(jnp.float32)

    # Deterministic synthetic parameters (raw f32; packed to kernel layout below).
    wq = init(ks[0], (D, D)); wk = init(ks[1], (D, D)); wv = init(ks[2], (D, D))
    wo_m = init(ks[3], (D, D))
    bq = init(ks[4], (D,), 0.02); bk = init(ks[5], (D,), 0.02)
    bv = init(ks[6], (D,), 0.02); bo_v = init(ks[7], (D,), 0.02)
    w1 = init(ks[8], (D, F)); b1 = init(ks[9], (F,), 0.02)
    w2 = init(ks[10], (F, D)); b2 = init(ks[11], (D,), 0.02)
    raw = (wq, wk, wv, bq, bk, bv, wo_m, bo_v, w1, b1, w2, b2)
    kparams = pack_params(raw)

    x = jax.random.normal(jax.random.PRNGKey(42), (B, S, D), dtype=jnp.float32)
    pe = positional_encoding(S, D)

    out = jax.block_until_ready(encoder_forward(x, pe, kparams, N_LAYERS))

    # 1) Tight check against a reference using the same bf16 matmul-operand
    #    numerics as the kernel.
    ref_matched = jax.block_until_ready(
        _ref_forward(x, pe, raw, N_LAYERS, matmul_dtype=MATMUL_DTYPE))
    # 2) Semantic check against the exact f32 PyTorch-equivalent math (looser
    #    tolerance bounds the bf16-operand drift across the 2-layer stack).
    ref_f32 = jax.block_until_ready(
        _ref_forward(x, pe, raw, N_LAYERS, matmul_dtype=jnp.float32))

    assert out.shape == (B, S, D)
    assert out.dtype == jnp.float32
    assert bool(jnp.all(jnp.isfinite(out)))
    assert bool(jnp.allclose(out, ref_matched, rtol=1e-2, atol=1e-2)), \
        "mismatch vs bf16-matched reference"
    assert bool(jnp.allclose(out, ref_f32, rtol=4e-2, atol=4e-2)), \
        "mismatch vs f32 reference"

    print("KERNEL_OK")
</pallas_src>

<mosaic_0001>
module attributes {stable_mosaic.version = 11 : i64} {
  func.func @_encoder_stack_kernel(%arg0: i32, %arg1: memref<2x8x128xf32, #tpu.memory_space<vmem>>, %arg2: memref<8x128xf32, #tpu.memory_space<vmem>>, %arg3: memref<128x384xbf16, #tpu.memory_space<vmem>>, %arg4: memref<1x384xf32, #tpu.memory_space<vmem>>, %arg5: memref<4x32x128xbf16, #tpu.memory_space<vmem>>, %arg6: memref<1x128xf32, #tpu.memory_space<vmem>>, %arg7: memref<128x256xbf16, #tpu.memory_space<vmem>>, %arg8: memref<1x256xf32, #tpu.memory_space<vmem>>, %arg9: memref<256x128xbf16, #tpu.memory_space<vmem>>, %arg10: memref<1x128xf32, #tpu.memory_space<vmem>>, %arg11: memref<2x8x128xf32, #tpu.memory_space<vmem>>) attributes {dimension_semantics = [#tpu.dimension_semantics<parallel>], iteration_bounds = array<i64: 1>, scalar_prefetch = 0 : i64, scratch_operands = 0 : i64, tpu.core_type = #tpu.core_type<tc>, window_params = [{transform_indices = @transform_0, window_bounds = array<i64: 2, 8, 128>}, {pipeline_mode = #tpu.pipeline_mode<synchronous>, transform_indices = @transform_1, window_bounds = array<i64: 8, 128>}, {pipeline_mode = #tpu.pipeline_mode<synchronous>, transform_indices = @transform_2, window_bounds = array<i64: 128, 384>}, {pipeline_mode = #tpu.pipeline_mode<synchronous>, transform_indices = @transform_3, window_bounds = array<i64: 1, 384>}, {pipeline_mode = #tpu.pipeline_mode<synchronous>, transform_indices = @transform_4, window_bounds = array<i64: 4, 32, 128>}, {pipeline_mode = #tpu.pipeline_mode<synchronous>, transform_indices = @transform_5, window_bounds = array<i64: 1, 128>}, {pipeline_mode = #tpu.pipeline_mode<synchronous>, transform_indices = @transform_6, window_bounds = array<i64: 128, 256>}, {pipeline_mode = #tpu.pipeline_mode<synchronous>, transform_indices = @transform_7, window_bounds = array<i64: 1, 256>}, {pipeline_mode = #tpu.pipeline_mode<synchronous>, transform_indices = @transform_8, window_bounds = array<i64: 256, 128>}, {pipeline_mode = #tpu.pipeline_mode<synchronous>, transform_indices = @transform_9, window_bounds = array<i64: 1, 128>}, {transform_indices = @transform_10, window_bounds = array<i64: 2, 8, 128>}]} {
    %c0 = arith.constant 0 : index
    %c0_0 = arith.constant 0 : index
    %0 = vector.load %arg3[%c0, %c0_0] : memref<128x384xbf16, #tpu.memory_space<vmem>>, vector<128x384xbf16>
    %c0_1 = arith.constant 0 : index
    %c0_2 = arith.constant 0 : index
    %c0_3 = arith.constant 0 : index
    %1 = vector.load %arg5[%c0_1, %c0_2, %c0_3] : memref<4x32x128xbf16, #tpu.memory_space<vmem>>, vector<4x32x128xbf16>
    %c0_4 = arith.constant 0 : index
    %c0_5 = arith.constant 0 : index
    %2 = vector.load %arg7[%c0_4, %c0_5] : memref<128x256xbf16, #tpu.memory_space<vmem>>, vector<128x256xbf16>
    %c0_6 = arith.constant 0 : index
    %c0_7 = arith.constant 0 : index
    %3 = vector.load %arg9[%c0_6, %c0_7] : memref<256x128xbf16, #tpu.memory_space<vmem>>, vector<256x128xbf16>
    %c0_8 = arith.constant 0 : index
    %c0_9 = arith.constant 0 : index
    %4 = vector.load %arg4[%c0_8, %c0_9] : memref<1x384xf32, #tpu.memory_space<vmem>>, vector<1x384xf32>
    %5 = vector.shape_cast %4 : vector<1x384xf32> to vector<1x384xf32>
    %6 = vector.broadcast %5 : vector<1x384xf32> to vector<16x384xf32>
    %c0_10 = arith.constant 0 : index
    %c0_11 = arith.constant 0 : index
    %7 = vector.load %arg6[%c0_10, %c0_11] : memref<1x128xf32, #tpu.memory_space<vmem>>, vector<1x128xf32>
    %8 = vector.shape_cast %7 : vector<1x128xf32> to vector<1x128xf32>
    %9 = vector.broadcast %8 : vector<1x128xf32> to vector<16x128xf32>
    %c0_12 = arith.constant 0 : index
    %c0_13 = arith.constant 0 : index
    %10 = vector.load %arg8[%c0_12, %c0_13] : memref<1x256xf32, #tpu.memory_space<vmem>>, vector<1x256xf32>
    %11 = vector.shape_cast %10 : vector<1x256xf32> to vector<1x256xf32>
    %12 = vector.broadcast %11 : vector<1x256xf32> to vector<16x256xf32>
    %c0_14 = arith.constant 0 : index
    %c0_15 = arith.constant 0 : index
    %13 = vector.load %arg10[%c0_14, %c0_15] : memref<1x128xf32, #tpu.memory_space<vmem>>, vector<1x128xf32>
    %14 = vector.shape_cast %13 : vector<1x128xf32> to vector<1x128xf32>
    %15 = vector.broadcast %14 : vector<1x128xf32> to vector<16x128xf32>
    %c0_16 = arith.constant 0 : index
    %c0_17 = arith.constant 0 : index
    %16 = vector.load %arg2[%c0_16, %c0_17] : memref<8x128xf32, #tpu.memory_space<vmem>>, vector<8x128xf32>
    %c0_18 = arith.constant 0 : index
    %c0_19 = arith.constant 0 : index
    %c0_20 = arith.constant 0 : index
    %17 = vector.load %arg1[%c0_18, %c0_19, %c0_20] : memref<2x8x128xf32, #tpu.memory_space<vmem>>, vector<1x8x128xf32>
    %18 = vector.shape_cast %17 : vector<1x8x128xf32> to vector<8x128xf32>
    %19 = arith.addf %18, %16 : vector<8x128xf32>
    %c1 = arith.constant 1 : index
    %c0_21 = arith.constant 0 : index
    %c0_22 = arith.constant 0 : index
    %20 = vector.load %arg1[%c1, %c0_21, %c0_22] : memref<2x8x128xf32, #tpu.memory_space<vmem>>, vector<1x8x128xf32>
    %21 = vector.shape_cast %20 : vector<1x8x128xf32> to vector<8x128xf32>
    %22 = arith.addf %21, %16 : vector<8x128xf32>
    %23 = tpu.concatenate %19, %22 in 0 : vector<8x128xf32>, vector<8x128xf32> -> vector<16x128xf32>
    %c0_i32 = arith.constant 0 : i32
    %c2_i32 = arith.constant 2 : i32
    %24 = arith.addi %c0_i32, %c2_i32 : i32
    %c1_i32 = arith.constant 1 : i32
    %25 = scf.for %arg12 = %c0_i32 to %24 step %c1_i32 iter_args(%arg13 = %23) -> (vector<16x128xf32>)  : i32 {
      %34 = arith.truncf %arg13 : vector<16x128xf32> to vector<16x128xbf16>
      %cst = arith.constant dense<0.000000e+00> : vector<16x384xf32>
      %35 = tpu.matmul %34, %0, %cst {dimension_numbers = #tpu.dot_dimension_numbers<[1], [0], [0], [1], [0, 0, 1, 1], [], []>} : vector<16x128xbf16>, vector<128x384xbf16>, vector<16x384xf32> -> vector<16x384xf32>
      %36 = arith.addf %35, %6 : vector<16x384xf32>
      %37 = vector.extract_strided_slice %36 {offsets = [0, 0], sizes = [8, 128], strides = [1, 1]} : vector<16x384xf32> to vector<8x128xf32>
      %38 = vector.extract_strided_slice %36 {offsets = [0, 128], sizes = [8, 128], strides = [1, 1]} : vector<16x384xf32> to vector<8x128xf32>
      %39 = vector.extract_strided_slice %36 {offsets = [0, 256], sizes = [8, 128], strides = [1, 1]} : vector<16x384xf32> to vector<8x128xf32>
      %cst_29 = arith.constant 0.000000e+00 : f32
      %40 = vector.broadcast %cst_29 : f32 to vector<8x128xf32>
      %41 = vector.extract_strided_slice %37 {offsets = [0, 0], sizes = [8, 32], strides = [1, 1]} : vector<8x128xf32> to vector<8x32xf32>
      %42 = arith.truncf %41 : vector<8x32xf32> to vector<8x32xbf16>
      %43 = vector.extract_strided_slice %38 {offsets = [0, 0], sizes = [8, 32], strides = [1, 1]} : vector<8x128xf32> to vector<8x32xf32>
      %44 = arith.truncf %43 : vector<8x32xf32> to vector<8x32xbf16>
      %45 = vector.extract_strided_slice %39 {offsets = [0, 0], sizes = [8, 32], strides = [1, 1]} : vector<8x128xf32> to vector<8x32xf32>
      %46 = arith.truncf %45 : vector<8x32xf32> to vector<8x32xbf16>
      %cst_30 = arith.constant dense<0.000000e+00> : vector<8x8xf32>
      %47 = tpu.matmul %42, %44, %cst_30 {dimension_numbers = #tpu.dot_dimension_numbers<[1], [1], [0], [0], [0, 0, 1, 0], [], []>} : vector<8x32xbf16>, vector<8x32xbf16>, vector<8x8xf32> -> vector<8x8xf32>
      %cst_31 = arith.constant 0.176776692 : f32
      %48 = vector.broadcast %cst_31 : f32 to vector<8x8xf32>
      %49 = arith.mulf %47, %48 : vector<8x8xf32>
      %cst_32 = arith.constant dense<0xFF800000> : vector<8xf32>
      %50 = vector.multi_reduction <maximumf>, %49, %cst_32 [1] : vector<8x8xf32> to vector<8xf32>
      %51 = vector.shape_cast %50 : vector<8xf32> to vector<8x1xf32>
      %52 = vector.broadcast %51 : vector<8x1xf32> to vector<8x8xf32>
      %53 = arith.subf %49, %52 : vector<8x8xf32>
      %54 = math.exp %53 : vector<8x8xf32>
      %cst_33 = arith.constant dense<0.000000e+00> : vector<8xf32>
      %55 = vector.multi_reduction <add>, %54, %cst_33 [1] : vector<8x8xf32> to vector<8xf32>
      %56 = vector.shape_cast %55 : vector<8xf32> to vector<8x1xf32>
      %57 = tpu.reciprocal %56 {approx = true} : vector<8x1xf32> -> vector<8x1xf32>
      %58 = vector.broadcast %57 : vector<8x1xf32> to vector<8x8xf32>
      %59 = arith.mulf %54, %58 : vector<8x8xf32>
      %60 = arith.truncf %59 : vector<8x8xf32> to vector<8x8xbf16>
      %cst_34 = arith.constant dense<0.000000e+00> : vector<8x32xf32>
      %61 = tpu.matmul %60, %46, %cst_34 {dimension_numbers = #tpu.dot_dimension_numbers<[1], [0], [0], [1], [0, 0, 1, 1], [], []>} : vector<8x8xbf16>, vector<8x32xbf16>, vector<8x32xf32> -> vector<8x32xf32>
      %62 = arith.truncf %61 : vector<8x32xf32> to vector<8x32xbf16>
      %63 = vector.extract_strided_slice %1 {offsets = [0, 0, 0], sizes = [1, 32, 128], strides = [1, 1, 1]} : vector<4x32x128xbf16> to vector<1x32x128xbf16>
      %64 = vector.shape_cast %63 : vector<1x32x128xbf16> to vector<32x128xbf16>
      %cst_35 = arith.constant dense<0.000000e+00> : vector<8x128xf32>
      %65 = tpu.matmul %62, %64, %cst_35 {dimension_numbers = #tpu.dot_dimension_numbers<[1], [0], [0], [1], [0, 0, 1, 1], [], []>} : vector<8x32xbf16>, vector<32x128xbf16>, vector<8x128xf32> -> vector<8x128xf32>
      %66 = arith.addf %40, %65 : vector<8x128xf32>
      %67 = vector.extract_strided_slice %37 {offsets = [0, 32], sizes = [8, 32], strides = [1, 1]} : vector<8x128xf32> to vector<8x32xf32>
      %68 = arith.truncf %67 : vector<8x32xf32> to vector<8x32xbf16>
      %69 = vector.extract_strided_slice %38 {offsets = [0, 32], sizes = [8, 32], strides = [1, 1]} : vector<8x128xf32> to vector<8x32xf32>
      %70 = arith.truncf %69 : vector<8x32xf32> to vector<8x32xbf16>
      %71 = vector.extract_strided_slice %39 {offsets = [0, 32], sizes = [8, 32], strides = [1, 1]} : vector<8x128xf32> to vector<8x32xf32>
      %72 = arith.truncf %71 : vector<8x32xf32> to vector<8x32xbf16>
      %cst_36 = arith.constant dense<0.000000e+00> : vector<8x8xf32>
      %73 = tpu.matmul %68, %70, %cst_36 {dimension_numbers = #tpu.dot_dimension_numbers<[1], [1], [0], [0], [0, 0, 1, 0], [], []>} : vector<8x32xbf16>, vector<8x32xbf16>, vector<8x8xf32> -> vector<8x8xf32>
      %cst_37 = arith.constant 0.176776692 : f32
      %74 = vector.broadcast %cst_37 : f32 to vector<8x8xf32>
      %75 = arith.mulf %73, %74 : vector<8x8xf32>
      %cst_38 = arith.constant dense<0xFF800000> : vector<8xf32>
      %76 = vector.multi_reduction <maximumf>, %75, %cst_38 [1] : vector<8x8xf32> to vector<8xf32>
      %77 = vector.shape_cast %76 : vector<8xf32> to vector<8x1xf32>
      %78 = vector.broadcast %77 : vector<8x1xf32> to vector<8x8xf32>
      %79 = arith.subf %75, %78 : vector<8x8xf32>
      %80 = math.exp %79 : vector<8x8xf32>
      %cst_39 = arith.constant dense<0.000000e+00> : vector<8xf32>
      %81 = vector.multi_reduction <add>, %80, %cst_39 [1] : vector<8x8xf32> to vector<8xf32>
      %82 = vector.shape_cast %81 : vector<8xf32> to vector<8x1xf32>
      %83 = tpu.reciprocal %82 {approx = true} : vector<8x1xf32> -> vector<8x1xf32>
      %84 = vector.broadcast %83 : vector<8x1xf32> to vector<8x8xf32>
      %85 = arith.mulf %80, %84 : vector<8x8xf32>
      %86 = arith.truncf %85 : vector<8x8xf32> to vector<8x8xbf16>
      %cst_40 = arith.constant dense<0.000000e+00> : vector<8x32xf32>
      %87 = tpu.matmul %86, %72, %cst_40 {dimension_numbers = #tpu.dot_dimension_numbers<[1], [0], [0], [1], [0, 0, 1, 1], [], []>} : vector<8x8xbf16>, vector<8x32xbf16>, vector<8x32xf32> -> vector<8x32xf32>
      %88 = arith.truncf %87 : vector<8x32xf32> to vector<8x32xbf16>
      %89 = vector.extract_strided_slice %1 {offsets = [1, 0, 0], sizes = [1, 32, 128], strides = [1, 1, 1]} : vector<4x32x128xbf16> to vector<1x32x128xbf16>
      %90 = vector.shape_cast %89 : vector<1x32x128xbf16> to vector<32x128xbf16>
      %cst_41 = arith.constant dense<0.000000e+00> : vector<8x128xf32>
      %91 = tpu.matmul %88, %90, %cst_41 {dimension_numbers = #tpu.dot_dimension_numbers<[1], [0], [0], [1], [0, 0, 1, 1], [], []>} : vector<8x32xbf16>, vector<32x128xbf16>, vector<8x128xf32> -> vector<8x128xf32>
      %92 = arith.addf %66, %91 : vector<8x128xf32>
      %93 = vector.extract_strided_slice %37 {offsets = [0, 64], sizes = [8, 32], strides = [1, 1]} : vector<8x128xf32> to vector<8x32xf32>
      %94 = arith.truncf %93 : vector<8x32xf32> to vector<8x32xbf16>
      %95 = vector.extract_strided_slice %38 {offsets = [0, 64], sizes = [8, 32], strides = [1, 1]} : vector<8x128xf32> to vector<8x32xf32>
      %96 = arith.truncf %95 : vector<8x32xf32> to vector<8x32xbf16>
      %97 = vector.extract_strided_slice %39 {offsets = [0, 64], sizes = [8, 32], strides = [1, 1]} : vector<8x128xf32> to vector<8x32xf32>
      %98 = arith.truncf %97 : vector<8x32xf32> to vector<8x32xbf16>
      %cst_42 = arith.constant dense<0.000000e+00> : vector<8x8xf32>
      %99 = tpu.matmul %94, %96, %cst_42 {dimension_numbers = #tpu.dot_dimension_numbers<[1], [1], [0], [0], [0, 0, 1, 0], [], []>} : vector<8x32xbf16>, vector<8x32xbf16>, vector<8x8xf32> -> vector<8x8xf32>
      %cst_43 = arith.constant 0.176776692 : f32
      %100 = vector.broadcast %cst_43 : f32 to vector<8x8xf32>
      %101 = arith.mulf %99, %100 : vector<8x8xf32>
      %cst_44 = arith.constant dense<0xFF800000> : vector<8xf32>
      %102 = vector.multi_reduction <maximumf>, %101, %cst_44 [1] : vector<8x8xf32> to vector<8xf32>
      %103 = vector.shape_cast %102 : vector<8xf32> to vector<8x1xf32>
      %104 = vector.broadcast %103 : vector<8x1xf32> to vector<8x8xf32>
      %105 = arith.subf %101, %104 : vector<8x8xf32>
      %106 = math.exp %105 : vector<8x8xf32>
      %cst_45 = arith.constant dense<0.000000e+00> : vector<8xf32>
      %107 = vector.multi_reduction <add>, %106, %cst_45 [1] : vector<8x8xf32> to vector<8xf32>
      %108 = vector.shape_cast %107 : vector<8xf32> to vector<8x1xf32>
      %109 = tpu.reciprocal %108 {approx = true} : vector<8x1xf32> -> vector<8x1xf32>
      %110 = vector.broadcast %109 : vector<8x1xf32> to vector<8x8xf32>
      %111 = arith.mulf %106, %110 : vector<8x8xf32>
      %112 = arith.truncf %111 : vector<8x8xf32> to vector<8x8xbf16>
      %cst_46 = arith.constant dense<0.000000e+00> : vector<8x32xf32>
      %113 = tpu.matmul %112, %98, %cst_46 {dimension_numbers = #tpu.dot_dimension_numbers<[1], [0], [0], [1], [0, 0, 1, 1], [], []>} : vector<8x8xbf16>, vector<8x32xbf16>, vector<8x32xf32> -> vector<8x32xf32>
      %114 = arith.truncf %113 : vector<8x32xf32> to vector<8x32xbf16>
      %115 = vector.extract_strided_slice %1 {offsets = [2, 0, 0], sizes = [1, 32, 128], strides = [1, 1, 1]} : vector<4x32x128xbf16> to vector<1x32x128xbf16>
      %116 = vector.shape_cast %115 : vector<1x32x128xbf16> to vector<32x128xbf16>
      %cst_47 = arith.constant dense<0.000000e+00> : vector<8x128xf32>
      %117 = tpu.matmul %114, %116, %cst_47 {dimension_numbers = #tpu.dot_dimension_numbers<[1], [0], [0], [1], [0, 0, 1, 1], [], []>} : vector<8x32xbf16>, vector<32x128xbf16>, vector<8x128xf32> -> vector<8x128xf32>
      %118 = arith.addf %92, %117 : vector<8x128xf32>
      %119 = vector.extract_strided_slice %37 {offsets = [0, 96], sizes = [8, 32], strides = [1, 1]} : vector<8x128xf32> to vector<8x32xf32>
      %120 = arith.truncf %119 : vector<8x32xf32> to vector<8x32xbf16>
      %121 = vector.extract_strided_slice %38 {offsets = [0, 96], sizes = [8, 32], strides = [1, 1]} : vector<8x128xf32> to vector<8x32xf32>
      %122 = arith.truncf %121 : vector<8x32xf32> to vector<8x32xbf16>
      %123 = vector.extract_strided_slice %39 {offsets = [0, 96], sizes = [8, 32], strides = [1, 1]} : vector<8x128xf32> to vector<8x32xf32>
      %124 = arith.truncf %123 : vector<8x32xf32> to vector<8x32xbf16>
      %cst_48 = arith.constant dense<0.000000e+00> : vector<8x8xf32>
      %125 = tpu.matmul %120, %122, %cst_48 {dimension_numbers = #tpu.dot_dimension_numbers<[1], [1], [0], [0], [0, 0, 1, 0], [], []>} : vector<8x32xbf16>, vector<8x32xbf16>, vector<8x8xf32> -> vector<8x8xf32>
      %cst_49 = arith.constant 0.176776692 : f32
      %126 = vector.broadcast %cst_49 : f32 to vector<8x8xf32>
      %127 = arith.mulf %125, %126 : vector<8x8xf32>
      %cst_50 = arith.constant dense<0xFF800000> : vector<8xf32>
      %128 = vector.multi_reduction <maximumf>, %127, %cst_50 [1] : vector<8x8xf32> to vector<8xf32>
      %129 = vector.shape_cast %128 : vector<8xf32> to vector<8x1xf32>
      %130 = vector.broadcast %129 : vector<8x1xf32> to vector<8x8xf32>
      %131 = arith.subf %127, %130 : vector<8x8xf32>
      %132 = math.exp %131 : vector<8x8xf32>
      %cst_51 = arith.constant dense<0.000000e+00> : vector<8xf32>
      %133 = vector.multi_reduction <add>, %132, %cst_51 [1] : vector<8x8xf32> to vector<8xf32>
      %134 = vector.shape_cast %133 : vector<8xf32> to vector<8x1xf32>
      %135 = tpu.reciprocal %134 {approx = true} : vector<8x1xf32> -> vector<8x1xf32>
      %136 = vector.broadcast %135 : vector<8x1xf32> to vector<8x8xf32>
      %137 = arith.mulf %132, %136 : vector<8x8xf32>
      %138 = arith.truncf %137 : vector<8x8xf32> to vector<8x8xbf16>
      %cst_52 = arith.constant dense<0.000000e+00> : vector<8x32xf32>
      %139 = tpu.matmul %138, %124, %cst_52 {dimension_numbers = #tpu.dot_dimension_numbers<[1], [0], [0], [1], [0, 0, 1, 1], [], []>} : vector<8x8xbf16>, vector<8x32xbf16>, vector<8x32xf32> -> vector<8x32xf32>
      %140 = arith.truncf %139 : vector<8x32xf32> to vector<8x32xbf16>
      %141 = vector.extract_strided_slice %1 {offsets = [3, 0, 0], sizes = [1, 32, 128], strides = [1, 1, 1]} : vector<4x32x128xbf16> to vector<1x32x128xbf16>
      %142 = vector.shape_cast %141 : vector<1x32x128xbf16> to vector<32x128xbf16>
      %cst_53 = arith.constant dense<0.000000e+00> : vector<8x128xf32>
      %143 = tpu.matmul %140, %142, %cst_53 {dimension_numbers = #tpu.dot_dimension_numbers<[1], [0], [0], [1], [0, 0, 1, 1], [], []>} : vector<8x32xbf16>, vector<32x128xbf16>, vector<8x128xf32> -> vector<8x128xf32>
      %144 = arith.addf %118, %143 : vector<8x128xf32>
      %145 = vector.extract_strided_slice %36 {offsets = [8, 0], sizes = [8, 128], strides = [1, 1]} : vector<16x384xf32> to vector<8x128xf32>
      %146 = vector.extract_strided_slice %36 {offsets = [8, 128], sizes = [8, 128], strides = [1, 1]} : vector<16x384xf32> to vector<8x128xf32>
      %147 = vector.extract_strided_slice %36 {offsets = [8, 256], sizes = [8, 128], strides = [1, 1]} : vector<16x384xf32> to vector<8x128xf32>
      %cst_54 = arith.constant 0.000000e+00 : f32
      %148 = vector.broadcast %cst_54 : f32 to vector<8x128xf32>
      %149 = vector.extract_strided_slice %145 {offsets = [0, 0], sizes = [8, 32], strides = [1, 1]} : vector<8x128xf32> to vector<8x32xf32>
      %150 = arith.truncf %149 : vector<8x32xf32> to vector<8x32xbf16>
      %151 = vector.extract_strided_slice %146 {offsets = [0, 0], sizes = [8, 32], strides = [1, 1]} : vector<8x128xf32> to vector<8x32xf32>
      %152 = arith.truncf %151 : vector<8x32xf32> to vector<8x32xbf16>
      %153 = vector.extract_strided_slice %147 {offsets = [0, 0], sizes = [8, 32], strides = [1, 1]} : vector<8x128xf32> to vector<8x32xf32>
      %154 = arith.truncf %153 : vector<8x32xf32> to vector<8x32xbf16>
      %cst_55 = arith.constant dense<0.000000e+00> : vector<8x8xf32>
      %155 = tpu.matmul %150, %152, %cst_55 {dimension_numbers = #tpu.dot_dimension_numbers<[1], [1], [0], [0], [0, 0, 1, 0], [], []>} : vector<8x32xbf16>, vector<8x32xbf16>, vector<8x8xf32> -> vector<8x8xf32>
      %cst_56 = arith.constant 0.176776692 : f32
      %156 = vector.broadcast %cst_56 : f32 to vector<8x8xf32>
      %157 = arith.mulf %155, %156 : vector<8x8xf32>
      %cst_57 = arith.constant dense<0xFF800000> : vector<8xf32>
      %158 = vector.multi_reduction <maximumf>, %157, %cst_57 [1] : vector<8x8xf32> to vector<8xf32>
      %159 = vector.shape_cast %158 : vector<8xf32> to vector<8x1xf32>
      %160 = vector.broadcast %159 : vector<8x1xf32> to vector<8x8xf32>
      %161 = arith.subf %157, %160 : vector<8x8xf32>
      %162 = math.exp %161 : vector<8x8xf32>
      %cst_58 = arith.constant dense<0.000000e+00> : vector<8xf32>
      %163 = vector.multi_reduction <add>, %162, %cst_58 [1] : vector<8x8xf32> to vector<8xf32>
      %164 = vector.shape_cast %163 : vector<8xf32> to vector<8x1xf32>
      %165 = tpu.reciprocal %164 {approx = true} : vector<8x1xf32> -> vector<8x1xf32>
      %166 = vector.broadcast %165 : vector<8x1xf32> to vector<8x8xf32>
      %167 = arith.mulf %162, %166 : vector<8x8xf32>
      %168 = arith.truncf %167 : vector<8x8xf32> to vector<8x8xbf16>
      %cst_59 = arith.constant dense<0.000000e+00> : vector<8x32xf32>
      %169 = tpu.matmul %168, %154, %cst_59 {dimension_numbers = #tpu.dot_dimension_numbers<[1], [0], [0], [1], [0, 0, 1, 1], [], []>} : vector<8x8xbf16>, vector<8x32xbf16>, vector<8x32xf32> -> vector<8x32xf32>
      %170 = arith.truncf %169 : vector<8x32xf32> to vector<8x32xbf16>
      %171 = vector.extract_strided_slice %1 {offsets = [0, 0, 0], sizes = [1, 32, 128], strides = [1, 1, 1]} : vector<4x32x128xbf16> to vector<1x32x128xbf16>
      %172 = vector.shape_cast %171 : vector<1x32x128xbf16> to vector<32x128xbf16>
      %cst_60 = arith.constant dense<0.000000e+00> : vector<8x128xf32>
      %173 = tpu.matmul %170, %172, %cst_60 {dimension_numbers = #tpu.dot_dimension_numbers<[1], [0], [0], [1], [0, 0, 1, 1], [], []>} : vector<8x32xbf16>, vector<32x128xbf16>, vector<8x128xf32> -> vector<8x128xf32>
      %174 = arith.addf %148, %173 : vector<8x128xf32>
      %175 = vector.extract_strided_slice %145 {offsets = [0, 32], sizes = [8, 32], strides = [1, 1]} : vector<8x128xf32> to vector<8x32xf32>
      %176 = arith.truncf %175 : vector<8x32xf32> to vector<8x32xbf16>
      %177 = vector.extract_strided_slice %146 {offsets = [0, 32], sizes = [8, 32], strides = [1, 1]} : vector<8x128xf32> to vector<8x32xf32>
      %178 = arith.truncf %177 : vector<8x32xf32> to vector<8x32xbf16>
      %179 = vector.extract_strided_slice %147 {offsets = [0, 32], sizes = [8, 32], strides = [1, 1]} : vector<8x128xf32> to vector<8x32xf32>
      %180 = arith.truncf %179 : vector<8x32xf32> to vector<8x32xbf16>
      %cst_61 = arith.constant dense<0.000000e+00> : vector<8x8xf32>
      %181 = tpu.matmul %176, %178, %cst_61 {dimension_numbers = #tpu.dot_dimension_numbers<[1], [1], [0], [0], [0, 0, 1, 0], [], []>} : vector<8x32xbf16>, vector<8x32xbf16>, vector<8x8xf32> -> vector<8x8xf32>
      %cst_62 = arith.constant 0.176776692 : f32
      %182 = vector.broadcast %cst_62 : f32 to vector<8x8xf32>
      %183 = arith.mulf %181, %182 : vector<8x8xf32>
      %cst_63 = arith.constant dense<0xFF800000> : vector<8xf32>
      %184 = vector.multi_reduction <maximumf>, %183, %cst_63 [1] : vector<8x8xf32> to vector<8xf32>
      %185 = vector.shape_cast %184 : vector<8xf32> to vector<8x1xf32>
      %186 = vector.broadcast %185 : vector<8x1xf32> to vector<8x8xf32>
      %187 = arith.subf %183, %186 : vector<8x8xf32>
      %188 = math.exp %187 : vector<8x8xf32>
      %cst_64 = arith.constant dense<0.000000e+00> : vector<8xf32>
      %189 = vector.multi_reduction <add>, %188, %cst_64 [1] : vector<8x8xf32> to vector<8xf32>
      %190 = vector.shape_cast %189 : vector<8xf32> to vector<8x1xf32>
      %191 = tpu.reciprocal %190 {approx = true} : vector<8x1xf32> -> vector<8x1xf32>
      %192 = vector.broadcast %191 : vector<8x1xf32> to vector<8x8xf32>
      %193 = arith.mulf %188, %192 : vector<8x8xf32>
      %194 = arith.truncf %193 : vector<8x8xf32> to vector<8x8xbf16>
      %cst_65 = arith.constant dense<0.000000e+00> : vector<8x32xf32>
      %195 = tpu.matmul %194, %180, %cst_65 {dimension_numbers = #tpu.dot_dimension_numbers<[1], [0], [0], [1], [0, 0, 1, 1], [], []>} : vector<8x8xbf16>, vector<8x32xbf16>, vector<8x32xf32> -> vector<8x32xf32>
      %196 = arith.truncf %195 : vector<8x32xf32> to vector<8x32xbf16>
      %197 = vector.extract_strided_slice %1 {offsets = [1, 0, 0], sizes = [1, 32, 128], strides = [1, 1, 1]} : vector<4x32x128xbf16> to vector<1x32x128xbf16>
      %198 = vector.shape_cast %197 : vector<1x32x128xbf16> to vector<32x128xbf16>
      %cst_66 = arith.constant dense<0.000000e+00> : vector<8x128xf32>
      %199 = tpu.matmul %196, %198, %cst_66 {dimension_numbers = #tpu.dot_dimension_numbers<[1], [0], [0], [1], [0, 0, 1, 1], [], []>} : vector<8x32xbf16>, vector<32x128xbf16>, vector<8x128xf32> -> vector<8x128xf32>
      %200 = arith.addf %174, %199 : vector<8x128xf32>
      %201 = vector.extract_strided_slice %145 {offsets = [0, 64], sizes = [8, 32], strides = [1, 1]} : vector<8x128xf32> to vector<8x32xf32>
      %202 = arith.truncf %201 : vector<8x32xf32> to vector<8x32xbf16>
      %203 = vector.extract_strided_slice %146 {offsets = [0, 64], sizes = [8, 32], strides = [1, 1]} : vector<8x128xf32> to vector<8x32xf32>
      %204 = arith.truncf %203 : vector<8x32xf32> to vector<8x32xbf16>
      %205 = vector.extract_strided_slice %147 {offsets = [0, 64], sizes = [8, 32], strides = [1, 1]} : vector<8x128xf32> to vector<8x32xf32>
      %206 = arith.truncf %205 : vector<8x32xf32> to vector<8x32xbf16>
      %cst_67 = arith.constant dense<0.000000e+00> : vector<8x8xf32>
      %207 = tpu.matmul %202, %204, %cst_67 {dimension_numbers = #tpu.dot_dimension_numbers<[1], [1], [0], [0], [0, 0, 1, 0], [], []>} : vector<8x32xbf16>, vector<8x32xbf16>, vector<8x8xf32> -> vector<8x8xf32>
      %cst_68 = arith.constant 0.176776692 : f32
      %208 = vector.broadcast %cst_68 : f32 to vector<8x8xf32>
      %209 = arith.mulf %207, %208 : vector<8x8xf32>
      %cst_69 = arith.constant dense<0xFF800000> : vector<8xf32>
      %210 = vector.multi_reduction <maximumf>, %209, %cst_69 [1] : vector<8x8xf32> to vector<8xf32>
      %211 = vector.shape_cast %210 : vector<8xf32> to vector<8x1xf32>
      %212 = vector.broadcast %211 : vector<8x1xf32> to vector<8x8xf32>
      %213 = arith.subf %209, %212 : vector<8x8xf32>
      %214 = math.exp %213 : vector<8x8xf32>
      %cst_70 = arith.constant dense<0.000000e+00> : vector<8xf32>
      %215 = vector.multi_reduction <add>, %214, %cst_70 [1] : vector<8x8xf32> to vector<8xf32>
      %216 = vector.shape_cast %215 : vector<8xf32> to vector<8x1xf32>
      %217 = tpu.reciprocal %216 {approx = true} : vector<8x1xf32> -> vector<8x1xf32>
      %218 = vector.broadcast %217 : vector<8x1xf32> to vector<8x8xf32>
      %219 = arith.mulf %214, %218 : vector<8x8xf32>
      %220 = arith.truncf %219 : vector<8x8xf32> to vector<8x8xbf16>
      %cst_71 = arith.constant dense<0.000000e+00> : vector<8x32xf32>
      %221 = tpu.matmul %220, %206, %cst_71 {dimension_numbers = #tpu.dot_dimension_numbers<[1], [0], [0], [1], [0, 0, 1, 1], [], []>} : vector<8x8xbf16>, vector<8x32xbf16>, vector<8x32xf32> -> vector<8x32xf32>
      %222 = arith.truncf %221 : vector<8x32xf32> to vector<8x32xbf16>
      %223 = vector.extract_strided_slice %1 {offsets = [2, 0, 0], sizes = [1, 32, 128], strides = [1, 1, 1]} : vector<4x32x128xbf16> to vector<1x32x128xbf16>
      %224 = vector.shape_cast %223 : vector<1x32x128xbf16> to vector<32x128xbf16>
      %cst_72 = arith.constant dense<0.000000e+00> : vector<8x128xf32>
      %225 = tpu.matmul %222, %224, %cst_72 {dimension_numbers = #tpu.dot_dimension_numbers<[1], [0], [0], [1], [0, 0, 1, 1], [], []>} : vector<8x32xbf16>, vector<32x128xbf16>, vector<8x128xf32> -> vector<8x128xf32>
      %226 = arith.addf %200, %225 : vector<8x128xf32>
      %227 = vector.extract_strided_slice %145 {offsets = [0, 96], sizes = [8, 32], strides = [1, 1]} : vector<8x128xf32> to vector<8x32xf32>
      %228 = arith.truncf %227 : vector<8x32xf32> to vector<8x32xbf16>
      %229 = vector.extract_strided_slice %146 {offsets = [0, 96], sizes = [8, 32], strides = [1, 1]} : vector<8x128xf32> to vector<8x32xf32>
      %230 = arith.truncf %229 : vector<8x32xf32> to vector<8x32xbf16>
      %231 = vector.extract_strided_slice %147 {offsets = [0, 96], sizes = [8, 32], strides = [1, 1]} : vector<8x128xf32> to vector<8x32xf32>
      %232 = arith.truncf %231 : vector<8x32xf32> to vector<8x32xbf16>
      %cst_73 = arith.constant dense<0.000000e+00> : vector<8x8xf32>
      %233 = tpu.matmul %228, %230, %cst_73 {dimension_numbers = #tpu.dot_dimension_numbers<[1], [1], [0], [0], [0, 0, 1, 0], [], []>} : vector<8x32xbf16>, vector<8x32xbf16>, vector<8x8xf32> -> vector<8x8xf32>
      %cst_74 = arith.constant 0.176776692 : f32
      %234 = vector.broadcast %cst_74 : f32 to vector<8x8xf32>
      %235 = arith.mulf %233, %234 : vector<8x8xf32>
      %cst_75 = arith.constant dense<0xFF800000> : vector<8xf32>
      %236 = vector.multi_reduction <maximumf>, %235, %cst_75 [1] : vector<8x8xf32> to vector<8xf32>
      %237 = vector.shape_cast %236 : vector<8xf32> to vector<8x1xf32>
      %238 = vector.broadcast %237 : vector<8x1xf32> to vector<8x8xf32>
      %239 = arith.subf %235, %238 : vector<8x8xf32>
      %240 = math.exp %239 : vector<8x8xf32>
      %cst_76 = arith.constant dense<0.000000e+00> : vector<8xf32>
      %241 = vector.multi_reduction <add>, %240, %cst_76 [1] : vector<8x8xf32> to vector<8xf32>
      %242 = vector.shape_cast %241 : vector<8xf32> to vector<8x1xf32>
      %243 = tpu.reciprocal %242 {approx = true} : vector<8x1xf32> -> vector<8x1xf32>
      %244 = vector.broadcast %243 : vector<8x1xf32> to vector<8x8xf32>
      %245 = arith.mulf %240, %244 : vector<8x8xf32>
      %246 = arith.truncf %245 : vector<8x8xf32> to vector<8x8xbf16>
      %cst_77 = arith.constant dense<0.000000e+00> : vector<8x32xf32>
      %247 = tpu.matmul %246, %232, %cst_77 {dimension_numbers = #tpu.dot_dimension_numbers<[1], [0], [0], [1], [0, 0, 1, 1], [], []>} : vector<8x8xbf16>, vector<8x32xbf16>, vector<8x32xf32> -> vector<8x32xf32>
      %248 = arith.truncf %247 : vector<8x32xf32> to vector<8x32xbf16>
      %249 = vector.extract_strided_slice %1 {offsets = [3, 0, 0], sizes = [1, 32, 128], strides = [1, 1, 1]} : vector<4x32x128xbf16> to vector<1x32x128xbf16>
      %250 = vector.shape_cast %249 : vector<1x32x128xbf16> to vector<32x128xbf16>
      %cst_78 = arith.constant dense<0.000000e+00> : vector<8x128xf32>
      %251 = tpu.matmul %248, %250, %cst_78 {dimension_numbers = #tpu.dot_dimension_numbers<[1], [0], [0], [1], [0, 0, 1, 1], [], []>} : vector<8x32xbf16>, vector<32x128xbf16>, vector<8x128xf32> -> vector<8x128xf32>
      %252 = arith.addf %226, %251 : vector<8x128xf32>
      %253 = tpu.concatenate %144, %252 in 0 : vector<8x128xf32>, vector<8x128xf32> -> vector<16x128xf32>
      %254 = arith.addf %253, %9 : vector<16x128xf32>
      %255 = arith.addf %254, %arg13 : vector<16x128xf32>
      %256 = vector.extract_strided_slice %255 {offsets = [0, 0], sizes = [8, 128], strides = [1, 1]} : vector<16x128xf32> to vector<8x128xf32>
      %257 = vector.shape_cast %256 : vector<8x128xf32> to vector<1x8x128xf32>
      %cst_79 = arith.constant dense<0.000000e+00> : vector<1xf32>
      %258 = vector.multi_reduction <add>, %257, %cst_79 [1, 2] : vector<1x8x128xf32> to vector<1xf32>
      %259 = vector.shape_cast %258 : vector<1xf32> to vector<1x1x1xf32>
      %260 = vector.extract %259[0, 0, 0] : f32 from vector<1x1x1xf32>
      %261 = arith.mulf %256, %256 : vector<8x128xf32>
      %262 = vector.shape_cast %261 : vector<8x128xf32> to vector<1x8x128xf32>
      %cst_80 = arith.constant dense<0.000000e+00> : vector<1xf32>
      %263 = vector.multi_reduction <add>, %262, %cst_80 [1, 2] : vector<1x8x128xf32> to vector<1xf32>
      %264 = vector.shape_cast %263 : vector<1xf32> to vector<1x1x1xf32>
      %265 = vector.extract %264[0, 0, 0] : f32 from vector<1x1x1xf32>
      %cst_81 = arith.constant 1.024000e+03 : f32
      %266 = arith.divf %260, %cst_81 : f32
      %cst_82 = arith.constant 1.024000e+03 : f32
      %267 = arith.divf %265, %cst_82 : f32
      %268 = arith.mulf %266, %266 : f32
      %269 = arith.subf %267, %268 : f32
      %270 = vector.broadcast %266 : f32 to vector<8x128xf32>
      %271 = arith.subf %256, %270 : vector<8x128xf32>
      %cst_83 = arith.constant 9.99999974E-6 : f32
      %272 = arith.addf %269, %cst_83 : f32
      %273 = math.rsqrt %272 : f32
      %274 = vector.broadcast %273 : f32 to vector<8x128xf32>
      %275 = arith.mulf %271, %274 : vector<8x128xf32>
      %276 = vector.extract_strided_slice %255 {offsets = [8, 0], sizes = [8, 128], strides = [1, 1]} : vector<16x128xf32> to vector<8x128xf32>
      %277 = vector.shape_cast %276 : vector<8x128xf32> to vector<1x8x128xf32>
      %cst_84 = arith.constant dense<0.000000e+00> : vector<1xf32>
      %278 = vector.multi_reduction <add>, %277, %cst_84 [1, 2] : vector<1x8x128xf32> to vector<1xf32>
      %279 = vector.shape_cast %278 : vector<1xf32> to vector<1x1x1xf32>
      %280 = vector.extract %279[0, 0, 0] : f32 from vector<1x1x1xf32>
      %281 = arith.mulf %276, %276 : vector<8x128xf32>
      %282 = vector.shape_cast %281 : vector<8x128xf32> to vector<1x8x128xf32>
      %cst_85 = arith.constant dense<0.000000e+00> : vector<1xf32>
      %283 = vector.multi_reduction <add>, %282, %cst_85 [1, 2] : vector<1x8x128xf32> to vector<1xf32>
      %284 = vector.shape_cast %283 : vector<1xf32> to vector<1x1x1xf32>
      %285 = vector.extract %284[0, 0, 0] : f32 from vector<1x1x1xf32>
      %cst_86 = arith.constant 1.024000e+03 : f32
      %286 = arith.divf %280, %cst_86 : f32
      %cst_87 = arith.constant 1.024000e+03 : f32
      %287 = arith.divf %285, %cst_87 : f32
      %288 = arith.mulf %286, %286 : f32
      %289 = arith.subf %287, %288 : f32
      %290 = vector.broadcast %286 : f32 to vector<8x128xf32>
      %291 = arith.subf %276, %290 : vector<8x128xf32>
      %cst_88 = arith.constant 9.99999974E-6 : f32
      %292 = arith.addf %289, %cst_88 : f32
      %293 = math.rsqrt %292 : f32
      %294 = vector.broadcast %293 : f32 to vector<8x128xf32>
      %295 = arith.mulf %291, %294 : vector<8x128xf32>
      %296 = tpu.concatenate %275, %295 in 0 : vector<8x128xf32>, vector<8x128xf32> -> vector<16x128xf32>
      %297 = arith.truncf %296 : vector<16x128xf32> to vector<16x128xbf16>
      %cst_89 = arith.constant dense<0.000000e+00> : vector<16x256xf32>
      %298 = tpu.matmul %297, %2, %cst_89 {dimension_numbers = #tpu.dot_dimension_numbers<[1], [0], [0], [1], [0, 0, 1, 1], [], []>} : vector<16x128xbf16>, vector<128x256xbf16>, vector<16x256xf32> -> vector<16x256xf32>
      %299 = arith.addf %298, %12 : vector<16x256xf32>
      %cst_90 = arith.constant 0.000000e+00 : f32
      %300 = vector.broadcast %cst_90 : f32 to vector<16x256xf32>
      %301 = arith.maximumf %299, %300 : vector<16x256xf32>
      %302 = arith.truncf %301 : vector<16x256xf32> to vector<16x256xbf16>
      %cst_91 = arith.constant dense<0.000000e+00> : vector<16x128xf32>
      %303 = tpu.matmul %302, %3, %cst_91 {dimension_numbers = #tpu.dot_dimension_numbers<[1], [0], [0], [1], [0, 0, 1, 1], [], []>} : vector<16x256xbf16>, vector<256x128xbf16>, vector<16x128xf32> -> vector<16x128xf32>
      %304 = arith.addf %303, %15 : vector<16x128xf32>
      %305 = arith.addf %304, %255 : vector<16x128xf32>
      %306 = vector.extract_strided_slice %305 {offsets = [0, 0], sizes = [8, 128], strides = [1, 1]} : vector<16x128xf32> to vector<8x128xf32>
      %307 = vector.shape_cast %306 : vector<8x128xf32> to vector<1x8x128xf32>
      %cst_92 = arith.constant dense<0.000000e+00> : vector<1xf32>
      %308 = vector.multi_reduction <add>, %307, %cst_92 [1, 2] : vector<1x8x128xf32> to vector<1xf32>
      %309 = vector.shape_cast %308 : vector<1xf32> to vector<1x1x1xf32>
      %310 = vector.extract %309[0, 0, 0] : f32 from vector<1x1x1xf32>
      %311 = arith.mulf %306, %306 : vector<8x128xf32>
      %312 = vector.shape_cast %311 : vector<8x128xf32> to vector<1x8x128xf32>
      %cst_93 = arith.constant dense<0.000000e+00> : vector<1xf32>
      %313 = vector.multi_reduction <add>, %312, %cst_93 [1, 2] : vector<1x8x128xf32> to vector<1xf32>
      %314 = vector.shape_cast %313 : vector<1xf32> to vector<1x1x1xf32>
      %315 = vector.extract %314[0, 0, 0] : f32 from vector<1x1x1xf32>
      %cst_94 = arith.constant 1.024000e+03 : f32
      %316 = arith.divf %310, %cst_94 : f32
      %cst_95 = arith.constant 1.024000e+03 : f32
      %317 = arith.divf %315, %cst_95 : f32
      %318 = arith.mulf %316, %316 : f32
      %319 = arith.subf %317, %318 : f32
      %320 = vector.broadcast %316 : f32 to vector<8x128xf32>
      %321 = arith.subf %306, %320 : vector<8x128xf32>
      %cst_96 = arith.constant 9.99999974E-6 : f32
      %322 = arith.addf %319, %cst_96 : f32
      %323 = math.rsqrt %322 : f32
      %324 = vector.broadcast %323 : f32 to vector<8x128xf32>
      %325 = arith.mulf %321, %324 : vector<8x128xf32>
      %326 = vector.extract_strided_slice %305 {offsets = [8, 0], sizes = [8, 128], strides = [1, 1]} : vector<16x128xf32> to vector<8x128xf32>
      %327 = vector.shape_cast %326 : vector<8x128xf32> to vector<1x8x128xf32>
      %cst_97 = arith.constant dense<0.000000e+00> : vector<1xf32>
      %328 = vector.multi_reduction <add>, %327, %cst_97 [1, 2] : vector<1x8x128xf32> to vector<1xf32>
      %329 = vector.shape_cast %328 : vector<1xf32> to vector<1x1x1xf32>
      %330 = vector.extract %329[0, 0, 0] : f32 from vector<1x1x1xf32>
      %331 = arith.mulf %326, %326 : vector<8x128xf32>
      %332 = vector.shape_cast %331 : vector<8x128xf32> to vector<1x8x128xf32>
      %cst_98 = arith.constant dense<0.000000e+00> : vector<1xf32>
      %333 = vector.multi_reduction <add>, %332, %cst_98 [1, 2] : vector<1x8x128xf32> to vector<1xf32>
      %334 = vector.shape_cast %333 : vector<1xf32> to vector<1x1x1xf32>
      %335 = vector.extract %334[0, 0, 0] : f32 from vector<1x1x1xf32>
      %cst_99 = arith.constant 1.024000e+03 : f32
      %336 = arith.divf %330, %cst_99 : f32
      %cst_100 = arith.constant 1.024000e+03 : f32
      %337 = arith.divf %335, %cst_100 : f32
      %338 = arith.mulf %336, %336 : f32
      %339 = arith.subf %337, %338 : f32
      %340 = vector.broadcast %336 : f32 to vector<8x128xf32>
      %341 = arith.subf %326, %340 : vector<8x128xf32>
      %cst_101 = arith.constant 9.99999974E-6 : f32
      %342 = arith.addf %339, %cst_101 : f32
      %343 = math.rsqrt %342 : f32
      %344 = vector.broadcast %343 : f32 to vector<8x128xf32>
      %345 = arith.mulf %341, %344 : vector<8x128xf32>
      %346 = tpu.concatenate %325, %345 in 0 : vector<8x128xf32>, vector<8x128xf32> -> vector<16x128xf32>
      scf.yield %346 : vector<16x128xf32>
    }
    %26 = vector.extract_strided_slice %25 {offsets = [0, 0], sizes = [8, 128], strides = [1, 1]} : vector<16x128xf32> to vector<8x128xf32>
    %c0_23 = arith.constant 0 : index
    %c0_24 = arith.constant 0 : index
    %c0_25 = arith.constant 0 : index
    %27 = vector.load %arg11[%c0_23, %c0_24, %c0_25] : memref<2x8x128xf32, #tpu.memory_space<vmem>>, vector<1x8x128xf32>
    %28 = vector.shape_cast %27 : vector<1x8x128xf32> to vector<8x128xf32>
    %29 = vector.shape_cast %26 : vector<8x128xf32> to vector<1x8x128xf32>
    tpu.vector_store %arg11[%c0_23, %c0_24, %c0_25], %29 {strides = array<i32>} : memref<2x8x128xf32, #tpu.memory_space<vmem>>, vector<1x8x128xf32>,
    %30 = vector.extract_strided_slice %25 {offsets = [8, 0], sizes = [8, 128], strides = [1, 1]} : vector<16x128xf32> to vector<8x128xf32>
    %c1_26 = arith.constant 1 : index
    %c0_27 = arith.constant 0 : index
    %c0_28 = arith.constant 0 : index
    %31 = vector.load %arg11[%c1_26, %c0_27, %c0_28] : memref<2x8x128xf32, #tpu.memory_space<vmem>>, vector<1x8x128xf32>
    %32 = vector.shape_cast %31 : vector<1x8x128xf32> to vector<8x128xf32>
    %33 = vector.shape_cast %30 : vector<8x128xf32> to vector<1x8x128xf32>
    tpu.vector_store %arg11[%c1_26, %c0_27, %c0_28], %33 {strides = array<i32>} : memref<2x8x128xf32, #tpu.memory_space<vmem>>, vector<1x8x128xf32>,
    return
  }
  func.func @transform_0(%arg0: i32) -> (i32, i32, i32) {
    %c0_i32 = arith.constant 0 : i32
    %c0_i32_0 = arith.constant 0 : i32
    %c0_i32_1 = arith.constant 0 : i32
    return %arg0, %c0_i32, %c0_i32_0 : i32, i32, i32
  }
  func.func @transform_1(%arg0: i32) -> (i32, i32) {
    %c0_i32 = arith.constant 0 : i32
    %c0_i32_0 = arith.constant 0 : i32
    %c0_i32_1 = arith.constant 0 : i32
    return %c0_i32, %c0_i32_0 : i32, i32
  }
  func.func @transform_2(%arg0: i32) -> (i32, i32) {
    %c0_i32 = arith.constant 0 : i32
    %c0_i32_0 = arith.constant 0 : i32
    %c0_i32_1 = arith.constant 0 : i32
    return %c0_i32, %c0_i32_0 : i32, i32
  }
  func.func @transform_3(%arg0: i32) -> (i32, i32) {
    %c0_i32 = arith.constant 0 : i32
    %c0_i32_0 = arith.constant 0 : i32
    %c0_i32_1 = arith.constant 0 : i32
    return %c0_i32, %c0_i32_0 : i32, i32
  }
  func.func @transform_4(%arg0: i32) -> (i32, i32, i32) {
    %c0_i32 = arith.constant 0 : i32
    %c0_i32_0 = arith.constant 0 : i32
    %c0_i32_1 = arith.constant 0 : i32
    %c0_i32_2 = arith.constant 0 : i32
    return %c0_i32, %c0_i32_0, %c0_i32_1 : i32, i32, i32
  }
  func.func @transform_5(%arg0: i32) -> (i32, i32) {
    %c0_i32 = arith.constant 0 : i32
    %c0_i32_0 = arith.constant 0 : i32
    %c0_i32_1 = arith.constant 0 : i32
    return %c0_i32, %c0_i32_0 : i32, i32
  }
  func.func @transform_6(%arg0: i32) -> (i32, i32) {
    %c0_i32 = arith.constant 0 : i32
    %c0_i32_0 = arith.constant 0 : i32
    %c0_i32_1 = arith.constant 0 : i32
    return %c0_i32, %c0_i32_0 : i32, i32
  }
  func.func @transform_7(%arg0: i32) -> (i32, i32) {
    %c0_i32 = arith.constant 0 : i32
    %c0_i32_0 = arith.constant 0 : i32
    %c0_i32_1 = arith.constant 0 : i32
    return %c0_i32, %c0_i32_0 : i32, i32
  }
  func.func @transform_8(%arg0: i32) -> (i32, i32) {
    %c0_i32 = arith.constant 0 : i32
    %c0_i32_0 = arith.constant 0 : i32
    %c0_i32_1 = arith.constant 0 : i32
    return %c0_i32, %c0_i32_0 : i32, i32
  }
  func.func @transform_9(%arg0: i32) -> (i32, i32) {
    %c0_i32 = arith.constant 0 : i32
    %c0_i32_0 = arith.constant 0 : i32
    %c0_i32_1 = arith.constant 0 : i32
    return %c0_i32, %c0_i32_0 : i32, i32
  }
  func.func @transform_10(%arg0: i32) -> (i32, i32, i32) {
    %c0_i32 = arith.constant 0 : i32
    %c0_i32_0 = arith.constant 0 : i32
    %c0_i32_1 = arith.constant 0 : i32
    return %arg0, %c0_i32, %c0_i32_0 : i32, i32, i32
  }
}

</mosaic_0001>

<bundles_post_ra>
// kernel: tpu_custom_call.1
= control target key start
LH: loop header
LB: loop body
LE: loop exit
PB: predicated region body
PF: predicated region fallthrough
CT: control target
= control target key end

     0   :  { %15 = vsyncpa [#allocation3], 0  ;;  %s3730_s0 = inlined_call_operand.hbm [shape: f32[2,8,128], index: 0, kind: input, shape index: {}]   ;;  %s3731_s1 = inlined_call_operand.hbm [shape: f32[8,128], index: 1, kind: input, shape index: {}]   ;;  %s3732_s2 = inlined_call_operand.hbm [shape: bf16[128,384], index: 2, kind: input, shape index: {}]   ;;  %s3733_s3 = inlined_call_operand.vmem [shape: f32[1,384], index: 3, kind: input, shape index: {}]   ;;  %s3734_s4 = inlined_call_operand.hbm [shape: bf16[4,32,128], index: 4, kind: input, shape index: {}]   ;;  %s3735_s5 = inlined_call_operand.vmem [shape: f32[1,128], index: 5, kind: input, shape index: {}]   ;;  %s3736_s6 = inlined_call_operand.hbm [shape: bf16[128,256], index: 6, kind: input, shape index: {}]   ;;  %s3737_s7 = inlined_call_operand.vmem [shape: f32[1,256], index: 7, kind: input, shape index: {}]   ;;  %s3738_s8 = inlined_call_operand.hbm [shape: bf16[256,128], index: 8, kind: input, shape index: {}]   ;;  %s3739_s9 = inlined_call_operand.vmem [shape: f32[1,128], index: 9, kind: input, shape index: {}]   ;;  %s3740_s10 = inlined_call_operand.hbm [shape: f32[2,8,128], index: 10, kind: output, shape index: {}]  }
   0x1   :  { %16 = vsyncpa [#allocation6], 0 }
   0x2   :  { %17 = vsyncpa [#allocation9], 0 }
   0x3   :  { %18 = vsyncpa [#allocation12], 0 }
   0x4   :  { %19 = vsyncpa [#allocation4], 0  ;;  %s2877_s13 = smov [#allocation5]   ;;  %s2878_s15 = smov [#allocation8]  }
   0x5   :  { %s38_s14 = sshll.u32 %s2877_s13, 4  ;;  %s61_s16 = sshll.u32 %s2878_s15, 4  ;;  %s39_s14 = int_to_ptr.vmem [resolvable:$true] %s38_s14  ;;  %s2951_s16 = int_to_ptr.vmem [resolvable:$true] %s61_s16 }
   0x6   :  { %s2689_s19 = scalar_lea.hbm %s3731_s1, 128 }
   0x7   :  { %p2690_p0 = scmp.ne.s32.totalorder %s3731_s1, %s2689_s19  ;;  %p2693_p1 = scmp.lt.u32.totalorder %s2689_s19, %s3731_s1 }
   0x9   :  { %p2695_p2 = pnand %p2693_p1, %p2690_p0 }
   0xb   :  { %2698 = shalt.err (!%p2695_p2)
}
   0xc   :  { %s2699_s24 = scalar_lea.vmem %s39_s14, 128  ;;  %p2704_p4 = scmp.lt.s32.totalorder %s39_s14, %s39_s14 }
   0xd   :  { %p2700_p3 = scmp.ne.s32.totalorder %s39_s14, %s2699_s24  ;;  %p2705_p5 = scmp.lt.s32.totalorder %s2699_s24, %s2699_s24 }
   0xf   :  { %p2706_p6 = por %p2705_p5, %p2704_p4 }
  0x11   :  { %p2707_p7 = pnand %p2706_p6, %p2700_p3 }
  0x13   :  { %2710 = shalt.err (!%p2707_p7)
}
  0x14   :  { %41 = dma.hbm_to_vmem [thread:$0]  %s3731_s1, 128, %s39_s14, [#allocation6]  }
  0x15   :  { %s2711_s29 = scalar_lea.hbm %s3734_s4, 1024 }
  0x16   :  { %p2712_p8 = scmp.ne.s32.totalorder %s3734_s4, %s2711_s29  ;;  %p2715_p9 = scmp.lt.u32.totalorder %s2711_s29, %s3734_s4 }
  0x18   :  { %p2717_p10 = pnand %p2715_p9, %p2712_p8 }
  0x1a   :  { %2720 = shalt.err (!%p2717_p10)
}
  0x1b   :  { %s2721_s15 = scalar_lea.vmem %s2951_s16, 1024  ;;  %p2726_p12 = scmp.lt.s32.totalorder %s2951_s16, %s2951_s16 }
  0x1c   :  { %p2722_p11 = scmp.ne.s32.totalorder %s2951_s16, %s2721_s15  ;;  %p2727_p13 = scmp.lt.s32.totalorder %s2721_s15, %s2721_s15 }
  0x1e   :  { %p2728_p0 = por %p2727_p13, %p2726_p12 }
  0x20   :  { %p2729_p1 = pnand %p2728_p0, %p2722_p11 }
  0x22   :  { %2732 = shalt.err (!%p2729_p1)
}
  0x23   :  { %s2879_s1 = smov 64   ;;  %s2880_s14 = smov 4  }
  0x24   :  { %67 = dma.hbm_to_vmem [thread:$0]  %s3734_s4, 1024, %s2951_s16, [#allocation9], %s2879_s1, %s2879_s1, %s2880_s14  }
  0x25   :  { %s2881_s19 = smov [#allocation2]   ;;  %s2733_s23 = scalar_lea.hbm %s3730_s0, 256 }
  0x26   :  { %s25_s20 = sshll.u32 %s2881_s19, 4  ;;  %p2734_p2 = scmp.ne.s32.totalorder %s3730_s0, %s2733_s23  ;;  %s26_s20 = int_to_ptr.vmem [resolvable:$true] %s25_s20 }
  0x27   :  { %p2737_p3 = scmp.lt.u32.totalorder %s2733_s23, %s3730_s0 }
  0x29   :  { %p2739_p4 = pnand %p2737_p3, %p2734_p2 }
  0x2b   :  { %2742 = shalt.err (!%p2739_p4)
}
  0x2c   :  { %s2743_s28 = scalar_lea.vmem %s26_s20, 256  ;;  %p2748_p6 = scmp.lt.s32.totalorder %s26_s20, %s26_s20 }
  0x2d   :  { %p2744_p5 = scmp.ne.s32.totalorder %s26_s20, %s2743_s28  ;;  %p2749_p7 = scmp.lt.s32.totalorder %s2743_s28, %s2743_s28 }
  0x2f   :  { %p2750_p8 = por %p2749_p7, %p2748_p6 }
  0x31   :  { %p2751_p9 = pnand %p2750_p8, %p2744_p5 }
  0x33   :  { %2754 = shalt.err (!%p2751_p9)
}
  0x34   :  { %s2882_s4 = smov 128   ;;  %s2883_s16 = smov 8  }
  0x35   :  { %31 = dma.hbm_to_vmem [thread:$0]  %s3730_s0, 256, %s26_s20, [#allocation3], %s2882_s4, %s2882_s4, %s2883_s16  }
  0x36   :  { %s2884_s11 = smov [#allocation7]   ;;  %s2755_s17 = scalar_lea.hbm %s3732_s2, 3072 }
  0x37   :  { %s47_s12 = sshll.u32 %s2884_s11, 4  ;;  %p2756_p10 = scmp.ne.s32.totalorder %s3732_s2, %s2755_s17  ;;  %s48_s12 = int_to_ptr.vmem [resolvable:$true] %s47_s12 }
  0x38   :  { %p2759_p11 = scmp.lt.u32.totalorder %s2755_s17, %s3732_s2 }
  0x3a   :  { %p2761_p12 = pnand %p2759_p11, %p2756_p10 }
  0x3c   :  { %2764 = shalt.err (!%p2761_p12)
}
  0x3d   :  { %s2765_s23 = scalar_lea.vmem %s48_s12, 3072  ;;  %p2770_p0 = scmp.lt.s32.totalorder %s48_s12, %s48_s12 }
  0x3e   :  { %p2766_p13 = scmp.ne.s32.totalorder %s48_s12, %s2765_s23  ;;  %p2771_p1 = scmp.lt.s32.totalorder %s2765_s23, %s2765_s23 }
  0x40   :  { %p2772_p2 = por %p2771_p1, %p2770_p0 }
  0x42   :  { %p2773_p3 = pnand %p2772_p2, %p2766_p13 }
  0x44   :  { %2776 = shalt.err (!%p2773_p3)
}
  0x45   :  { %s2885_s0 = smov 192   ;;  %s2886_s20 = smov 12  }
  0x46   :  { %53 = dma.hbm_to_vmem [thread:$0]  %s3732_s2, 3072, %s48_s12, [#allocation6], %s2885_s0, %s2885_s0, %s2886_s20  }
  0x47   :  { %s2887_s26 = smov [#allocation10]   ;;  %s2888_s28 = smov [#allocation11]  }
  0x48   :  { %s75_s27 = sshll.u32 %s2887_s26, 4  ;;  %s89_s29 = sshll.u32 %s2888_s28, 4  ;;  %s76_s27 = int_to_ptr.vmem [resolvable:$true] %s75_s27  ;;  %s3012_s29 = int_to_ptr.vmem [resolvable:$true] %s89_s29 }
  0x49   :  { %s2777_s13 = scalar_lea.hbm %s3736_s6, 2048 }
  0x4a   :  { %p2778_p4 = scmp.ne.s32.totalorder %s3736_s6, %s2777_s13  ;;  %p2781_p5 = scmp.lt.u32.totalorder %s2777_s13, %s3736_s6 }
  0x4c   :  { %p2783_p6 = pnand %p2781_p5, %p2778_p4 }
  0x4e   :  { %2786 = shalt.err (!%p2783_p6)
}
  0x4f   :  { %s2787_s2 = scalar_lea.vmem %s76_s27, 2048  ;;  %p2792_p8 = scmp.lt.s32.totalorder %s76_s27, %s76_s27 }
  0x50   :  { %p2788_p7 = scmp.ne.s32.totalorder %s76_s27, %s2787_s2  ;;  %p2793_p9 = scmp.lt.s32.totalorder %s2787_s2, %s2787_s2 }
  0x52   :  { %p2794_p10 = por %p2793_p9, %p2792_p8 }
  0x54   :  { %p2795_p11 = pnand %p2794_p10, %p2788_p7 }
  0x56   :  { %2798 = shalt.err (!%p2795_p11)
}
  0x57   :  { %81 = dma.hbm_to_vmem [thread:$0]  %s3736_s6, 2048, %s76_s27, [#allocation9], %s2882_s4, %s2882_s4, %s2883_s16  }
  0x58   :  { %s2799_s0 = scalar_lea.hbm %s3738_s8, 2048 }
  0x59   :  { %p2800_p12 = scmp.ne.s32.totalorder %s3738_s8, %s2799_s0  ;;  %p2803_p13 = scmp.lt.u32.totalorder %s2799_s0, %s3738_s8 }
  0x5b   :  { %p2805_p0 = pnand %p2803_p13, %p2800_p12 }
  0x5d   :  { %2808 = shalt.err (!%p2805_p0)
}
  0x5e   :  { %s2809_s28 = scalar_lea.vmem %s3012_s29, 2048  ;;  %p2814_p2 = scmp.lt.s32.totalorder %s3012_s29, %s3012_s29 }
  0x5f   :  { %p2810_p1 = scmp.ne.s32.totalorder %s3012_s29, %s2809_s28  ;;  %p2815_p3 = scmp.lt.s32.totalorder %s2809_s28, %s2809_s28 }
  0x61   :  { %p2816_p4 = por %p2815_p3, %p2814_p2 }
  0x63   :  { %p2817_p5 = pnand %p2816_p4, %p2810_p1 }
  0x65   :  { %2820 = shalt.err (!%p2817_p5)
}
  0x66   :  { %95 = dma.hbm_to_vmem [thread:$0]  %s3738_s8, 2048, %s3012_s29, [#allocation12], %s2879_s1, %s2879_s1, %s2880_s14  }
  0x67   :  { %2855 = dma.done.wait [#allocation3], 256  }
  0x68   :  { %2856 = vsyncadd [#allocation3], 4294967040 }
  0x69   :  { %2857 = dma.done.wait [#allocation6], 3200  }
  0x6a   :  { %2858 = vsyncadd [#allocation6], 4294964096 }
  0x6b   :  { %2859 = dma.done.wait [#allocation9], 3072  }
  0x6c   :  { %2860 = vsyncadd [#allocation9], 4294964224 }
  0x6d   :  { %2861 = dma.done.wait [#allocation12], 2048  }
  0x6e   :  { %2862 = vsyncadd [#allocation12], 4294965248  ;;  %v3049_v0 = vld [vmem:[#allocation7] sm:$0xff]  ;;  %v3051_v1 = vld [vmem:[#allocation7 + $0x8] sm:$0xf]  ;;  %v215_v39 = vlaneseq }
  0x6f   :  { %3781 = vst [vmem:[#allocation19_spill] sm:$0xff] %v3049_v0  ;;  %3782 = vst [vmem:[#allocation20_spill] sm:$0xff] %v3051_v1  ;;  %v3053_v2 = vld [vmem:[#allocation7 + $0xc] sm:$0xff]  ;;  %v3055_v3 = vld [vmem:[#allocation7 + $0x14] sm:$0xf] }
  0x70   :  { %3783 = vst [vmem:[#allocation21_spill] sm:$0xff] %v3053_v2  ;;  %3784 = vst [vmem:[#allocation22_spill] sm:$0xff] %v3055_v3  ;;  %v3057_v4 = vld [vmem:[#allocation7 + $0x18] sm:$0xff]  ;;  %v3059_v5 = vld [vmem:[#allocation7 + $0x20] sm:$0xf]  ;;  %v216_v52 = vshrl.u32 %v215_v39, 7 }
  0x71   :  { %3785 = vst [vmem:[#allocation23_spill] sm:$0xff] %v3057_v4  ;;  %3786 = vst [vmem:[#allocation24_spill] sm:$0xff] %v3059_v5  ;;  %v3061_v6 = vld [vmem:[#allocation7 + $0x24] sm:$0xff]  ;;  %v3063_v7 = vld [vmem:[#allocation7 + $0x2c] sm:$0xf] }
  0x72   :  { %3787 = vst [vmem:[#allocation25_spill] sm:$0xff] %v3061_v6  ;;  %3788 = vst [vmem:[#allocation26_spill] sm:$0xff] %v3063_v7  ;;  %v3065_v8 = vld [vmem:[#allocation7 + $0x30] sm:$0xff]  ;;  %v3067_v9 = vld [vmem:[#allocation7 + $0x38] sm:$0xf] }
  0x73   :  { %3789 = vst [vmem:[#allocation27_spill] sm:$0xff] %v3065_v8  ;;  %3790 = vst [vmem:[#allocation28_spill] sm:$0xff] %v3067_v9  ;;  %v3069_v10 = vld [vmem:[#allocation7 + $0x3c] sm:$0xff]  ;;  %v3071_v11 = vld [vmem:[#allocation7 + $0x44] sm:$0xf] }
  0x74   :  { %3791 = vst [vmem:[#allocation29_spill] sm:$0xff] %v3069_v10  ;;  %3792 = vst [vmem:[#allocation30_spill] sm:$0xff] %v3071_v11  ;;  %v3073_v12 = vld [vmem:[#allocation7 + $0x48] sm:$0xff]  ;;  %v3075_v13 = vld [vmem:[#allocation7 + $0x50] sm:$0xf] }
  0x75   :  { %3793 = vst [vmem:[#allocation31_spill] sm:$0xff] %v3073_v12  ;;  %3794 = vst [vmem:[#allocation32_spill] sm:$0xff] %v3075_v13  ;;  %v3077_v14 = vld [vmem:[#allocation7 + $0x54] sm:$0xff]  ;;  %v3079_v15 = vld [vmem:[#allocation7 + $0x5c] sm:$0xf] }
  0x76   :  { %3795 = vst [vmem:[#allocation33_spill] sm:$0xff] %v3077_v14  ;;  %3796 = vst [vmem:[#allocation34_spill] sm:$0xff] %v3079_v15  ;;  %v3081_v16 = vld [vmem:[#allocation7 + $0x60] sm:$0xff]  ;;  %v3083_v17 = vld [vmem:[#allocation7 + $0x68] sm:$0xf] }
  0x77   :  { %3797 = vst [vmem:[#allocation35_spill] sm:$0xff] %v3081_v16  ;;  %3798 = vst [vmem:[#allocation36_spill] sm:$0xff] %v3083_v17  ;;  %v3085_v18 = vld [vmem:[#allocation7 + $0x6c] sm:$0xff]  ;;  %v3087_v19 = vld [vmem:[#allocation7 + $0x74] sm:$0xf] }
  0x78   :  { %3799 = vst [vmem:[#allocation37_spill] sm:$0xff] %v3085_v18  ;;  %3800 = vst [vmem:[#allocation38_spill] sm:$0xff] %v3087_v19  ;;  %v3089_v20 = vld [vmem:[#allocation7 + $0x78] sm:$0xff]  ;;  %v3091_v21 = vld [vmem:[#allocation7 + $0x80] sm:$0xf] }
  0x79   :  { %3801 = vst [vmem:[#allocation39_spill] sm:$0xff] %v3089_v20  ;;  %v3093_v22 = vld [vmem:[#allocation7 + $0x84] sm:$0xff]  ;;  %v3095_v23 = vld [vmem:[#allocation7 + $0x8c] sm:$0xf]  ;;  %v3097_v24 = vld [vmem:[#allocation7 + $0x90] sm:$0xff] }
  0x7a   :  { %v3099_v25 = vld [vmem:[#allocation7 + $0x98] sm:$0xf]  ;;  %v3101_v26 = vld [vmem:[#allocation7 + $0x9c] sm:$0xff]  ;;  %v3103_v27 = vld [vmem:[#allocation7 + $0xa4] sm:$0xf] }
  0x7b   :  { %v3105_v28 = vld [vmem:[#allocation7 + $0xa8] sm:$0xff]  ;;  %v3107_v29 = vld [vmem:[#allocation7 + $0xb0] sm:$0xf]  ;;  %v3109_v30 = vld [vmem:[#allocation7 + $0xb4] sm:$0xff] }
  0x7c   :  { %v3111_v31 = vld [vmem:[#allocation7 + $0xbc] sm:$0xf]  ;;  %v3113_v32 = vld [vmem:[#allocation8] sm:$0xf]  ;;  %v3115_v33 = vld [vmem:[#allocation8 + $0x4] sm:$0xf] }
  0x7d   :  { %v3117_v34 = vld [vmem:[#allocation8 + $0x8] sm:$0xf]  ;;  %v3119_v35 = vld [vmem:[#allocation8 + $0xc] sm:$0xf]  ;;  %v3121_v36 = vld [vmem:[#allocation8 + $0x10] sm:$0xf] }
  0x7e   :  { %v3123_v37 = vld [vmem:[#allocation8 + $0x14] sm:$0xf]  ;;  %v3125_v38 = vld [vmem:[#allocation8 + $0x18] sm:$0xf]  ;;  %v3127_v40 = vld [vmem:[#allocation8 + $0x1c] sm:$0xf] }
  0x7f   :  { %v3129_v41 = vld [vmem:[#allocation8 + $0x20] sm:$0xf]  ;;  %v3131_v42 = vld [vmem:[#allocation8 + $0x24] sm:$0xf]  ;;  %v3133_v43 = vld [vmem:[#allocation8 + $0x28] sm:$0xf] }
  0x80   :  { %v3135_v44 = vld [vmem:[#allocation8 + $0x2c] sm:$0xf]  ;;  %v3137_v45 = vld [vmem:[#allocation8 + $0x30] sm:$0xf]  ;;  %v3139_v46 = vld [vmem:[#allocation8 + $0x34] sm:$0xf] }
  0x81   :  { %v3141_v47 = vld [vmem:[#allocation8 + $0x38] sm:$0xf]  ;;  %v3143_v48 = vld [vmem:[#allocation8 + $0x3c] sm:$0xf]  ;;  %v3145_v49 = vld [vmem:[#allocation10] sm:$0xff] }
  0x82   :  { %3802 = vst [vmem:[#allocation40_spill] sm:$0xff] %v3145_v49  ;;  %v3147_v50 = vld [vmem:[#allocation10 + $0x8] sm:$0xff]  ;;  %v3149_v51 = vld [vmem:[#allocation10 + $0x10] sm:$0xff]  ;;  %v3151_v53 = vld [vmem:[#allocation10 + $0x18] sm:$0xff] }
  0x83   :  { %3803 = vst [vmem:[#allocation41_spill] sm:$0xff] %v3147_v50  ;;  %3804 = vst [vmem:[#allocation42_spill] sm:$0xff] %v3149_v51  ;;  %v3153_v54 = vld [vmem:[#allocation10 + $0x20] sm:$0xff]  ;;  %v3155_v55 = vld [vmem:[#allocation10 + $0x28] sm:$0xff] }
  0x84   :  { %3805 = vst [vmem:[#allocation43_spill] sm:$0xff] %v3151_v53  ;;  %3806 = vst [vmem:[#allocation44_spill] sm:$0xff] %v3153_v54  ;;  %v3157_v56 = vld [vmem:[#allocation10 + $0x30] sm:$0xff]  ;;  %v3159_v57 = vld [vmem:[#allocation10 + $0x38] sm:$0xff]  ;;  %v217_v54 = vsub.s32 0, %v216_v52 }
  0x85   :  { %3807 = vst [vmem:[#allocation45_spill] sm:$0xff] %v3155_v55  ;;  %3808 = vst [vmem:[#allocation46_spill] sm:$0xff] %v3157_v56  ;;  %v3161_v58 = vld [vmem:[#allocation10 + $0x40] sm:$0xff]  ;;  %v3163_v59 = vld [vmem:[#allocation10 + $0x48] sm:$0xff]  ;;  %v221_v55 = vsub.s32 1, %v216_v52 }
  0x86   :  { %3809 = vst [vmem:[#allocation47_spill] sm:$0xff] %v3159_v57  ;;  %3810 = vst [vmem:[#allocation48_spill] sm:$0xff] %v3161_v58  ;;  %v3165_v60 = vld [vmem:[#allocation10 + $0x50] sm:$0xff]  ;;  %v3167_v61 = vld [vmem:[#allocation10 + $0x58] sm:$0xff]  ;;  %v225_v58 = vsub.s32 2, %v216_v52 }
  0x87   :  { %3811 = vst [vmem:[#allocation49_spill] sm:$0xff] %v3163_v59  ;;  %3812 = vst [vmem:[#allocation50_spill] sm:$0xff] %v3165_v60  ;;  %v3169_v62 = vld [vmem:[#allocation10 + $0x60] sm:$0xff]  ;;  %v3171_v63 = vld [vmem:[#allocation10 + $0x68] sm:$0xff] }
  0x88   :  { %3813 = vst [vmem:[#allocation51_spill] sm:$0xff] %v3167_v61  ;;  %3814 = vst [vmem:[#allocation52_spill] sm:$0xff] %v3169_v62  ;;  %v3173_v39 = vld [vmem:[#allocation10 + $0x70] sm:$0xff]  ;;  %v3175_v51 = vld [vmem:[#allocation10 + $0x78] sm:$0xff] }
  0x89   :  { %3815 = vst [vmem:[#allocation53_spill] sm:$0xff] %v3171_v63  ;;  %3816 = vst [vmem:[#allocation54_spill] sm:$0xff] %v3173_v39  ;;  %v3177_v56 = vld [vmem:[#allocation11] sm:$0xf]  ;;  %v3179_v57 = vld [vmem:[#allocation11 + $0x4] sm:$0xf] }
  0x8a   :  { %3817 = vst [vmem:[#allocation55_spill] sm:$0xff] %v3175_v51  ;;  %3818 = vst [vmem:[#allocation56_spill] sm:$0xff] %v3177_v56  ;;  %v3181_v59 = vld [vmem:[#allocation11 + $0x8] sm:$0xf]  ;;  %v3183_v60 = vld [vmem:[#allocation11 + $0xc] sm:$0xf] }
  0x8b   :  { %3819 = vst [vmem:[#allocation57_spill] sm:$0xff] %v3179_v57  ;;  %3820 = vst [vmem:[#allocation58_spill] sm:$0xff] %v3181_v59  ;;  %v3185_v61 = vld [vmem:[#allocation11 + $0x10] sm:$0xf]  ;;  %v3187_v62 = vld [vmem:[#allocation11 + $0x14] sm:$0xf] }
  0x8c   :  { %3821 = vst [vmem:[#allocation59_spill] sm:$0xff] %v3183_v60  ;;  %3822 = vst [vmem:[#allocation60_spill] sm:$0xff] %v3185_v61  ;;  %v3189_v63 = vld [vmem:[#allocation11 + $0x18] sm:$0xf]  ;;  %v3191_v39 = vld [vmem:[#allocation11 + $0x1c] sm:$0xf] }
  0x8d   :  { %3823 = vst [vmem:[#allocation61_spill] sm:$0xff] %v3187_v62  ;;  %3824 = vst [vmem:[#allocation62_spill] sm:$0xff] %v3189_v63  ;;  %v3193_v53 = vld [vmem:[#allocation11 + $0x20] sm:$0xf]  ;;  %v3195_v51 = vld [vmem:[#allocation11 + $0x24] sm:$0xf] }
  0x8e   :  { %3825 = vst [vmem:[#allocation63_spill] sm:$0xff] %v3191_v39  ;;  %3826 = vst [vmem:[#allocation64_spill] sm:$0xff] %v3193_v53  ;;  %v3197_v56 = vld [vmem:[#allocation11 + $0x28] sm:$0xf]  ;;  %v3199_v57 = vld [vmem:[#allocation11 + $0x2c] sm:$0xf] }
  0x8f   :  { %3827 = vst [vmem:[#allocation65_spill] sm:$0xff] %v3195_v51  ;;  %3828 = vst [vmem:[#allocation66_spill] sm:$0xff] %v3197_v56  ;;  %v3201_v52 = vld [vmem:[#allocation11 + $0x30] sm:$0xf]  ;;  %v3203_v59 = vld [vmem:[#allocation11 + $0x34] sm:$0xf] }
  0x90   :  { %3829 = vst [vmem:[#allocation67_spill] sm:$0xff] %v3199_v57  ;;  %3830 = vst [vmem:[#allocation68_spill] sm:$0xff] %v3201_v52  ;;  %v3205_v60 = vld [vmem:[#allocation11 + $0x38] sm:$0xf]  ;;  %v3207_v61 = vld [vmem:[#allocation11 + $0x3c] sm:$0xf] }
  0x91   :  { %3831 = vst [vmem:[#allocation69_spill] sm:$0xff] %v3203_v59  ;;  %3832 = vst [vmem:[#allocation70_spill] sm:$0xff] %v3205_v60  ;;  %v3209_v62 = vld [vmem:[#allocation11 + $0x40] sm:$0xf]  ;;  %v3211_v63 = vld [vmem:[#allocation11 + $0x44] sm:$0xf] }
  0x92   :  { %3833 = vst [vmem:[#allocation71_spill] sm:$0xff] %v3207_v61  ;;  %3834 = vst [vmem:[#allocation72_spill] sm:$0xff] %v3209_v62  ;;  %v3213_v39 = vld [vmem:[#allocation11 + $0x48] sm:$0xf]  ;;  %v3215_v53 = vld [vmem:[#allocation11 + $0x4c] sm:$0xf] }
  0x93   :  { %3835 = vst [vmem:[#allocation73_spill] sm:$0xff] %v3211_v63  ;;  %3836 = vst [vmem:[#allocation74_spill] sm:$0xff] %v3213_v39  ;;  %v3217_v51 = vld [vmem:[#allocation11 + $0x50] sm:$0xf]  ;;  %v3219_v56 = vld [vmem:[#allocation11 + $0x54] sm:$0xf] }
  0x94   :  { %3837 = vst [vmem:[#allocation75_spill] sm:$0xff] %v3215_v53  ;;  %3838 = vst [vmem:[#allocation76_spill] sm:$0xff] %v3217_v51  ;;  %v3221_v57 = vld [vmem:[#allocation11 + $0x58] sm:$0xf]  ;;  %v3223_v52 = vld [vmem:[#allocation11 + $0x5c] sm:$0xf] }
  0x95   :  { %3839 = vst [vmem:[#allocation77_spill] sm:$0xff] %v3219_v56  ;;  %3840 = vst [vmem:[#allocation78_spill] sm:$0xff] %v3221_v57  ;;  %v3225_v59 = vld [vmem:[#allocation11 + $0x60] sm:$0xf]  ;;  %v3227_v60 = vld [vmem:[#allocation11 + $0x64] sm:$0xf] }
  0x96   :  { %3841 = vst [vmem:[#allocation79_spill] sm:$0xff] %v3223_v52  ;;  %3842 = vst [vmem:[#allocation80_spill] sm:$0xff] %v3225_v59  ;;  %v3229_v61 = vld [vmem:[#allocation11 + $0x68] sm:$0xf]  ;;  %v3231_v62 = vld [vmem:[#allocation11 + $0x6c] sm:$0xf] }
  0x97   :  { %3843 = vst [vmem:[#allocation81_spill] sm:$0xff] %v3227_v60  ;;  %3844 = vst [vmem:[#allocation82_spill] sm:$0xff] %v3229_v61  ;;  %v3233_v63 = vld [vmem:[#allocation11 + $0x70] sm:$0xf]  ;;  %v3235_v39 = vld [vmem:[#allocation11 + $0x74] sm:$0xf] }
  0x98   :  { %3845 = vst [vmem:[#allocation83_spill] sm:$0xff] %v3231_v62  ;;  %3846 = vst [vmem:[#allocation84_spill] sm:$0xff] %v3233_v63  ;;  %v3237_v53 = vld [vmem:[#allocation11 + $0x78] sm:$0xf]  ;;  %v3239_v51 = vld [vmem:[#allocation11 + $0x7c] sm:$0xf] }
  0x99   :  { %3847 = vst [vmem:[#allocation85_spill] sm:$0xff] %v3235_v39  ;;  %3848 = vst [vmem:[#allocation86_spill] sm:$0xff] %v3237_v53  ;;  %v213_v57 = vld [vmem:[%s3733_s3] sm:$0x7]  ;;  %v256_v60 = vld [vmem:[#allocation5] sm:$0xff]  ;;  %s3271_s3 = smov 0  }
  0x9a   :  { %3849 = vst [vmem:[#allocation87_spill] sm:$0xff] %v3239_v51  ;;  %v3247_v59 = vld [vmem:[%s3735_s5] ss:$0 sm:$0xff]  ;;  %v3252_v63 = vrot.slane %v213_v57, %v217_v54  ;;  %v3254_v39 = vrot.slane %v213_v57, %v221_v55  ;;  %v3256_v53 = vrot.slane %v213_v57, %v225_v58  ;;  %v260_v50 = vld [vmem:[#allocation2 + $0x8] sm:$0xff] }
  0x9b   :  { %3850 = vst [vmem:[#allocation88_spill] sm:$0xff] %v3247_v59  ;;  %v237_v61 = vld [vmem:[%s3737_s7] sm:$0x3]  ;;  %v261_v59 = vadd.f32 %v260_v50, %v256_v60  }
  0x9c   :  { %v3258_v51 = vrot.slane %v237_v61, %v217_v54  ;;  %v3263_v62 = vld [vmem:[%s3739_s9] ss:$0 sm:$0xff]  ;;  %v3265_v56 = vrot.slane %v237_v61, %v221_v55 }
  0x9d   :  { %v257_v52 = vld [vmem:[#allocation2] sm:$0xff] }
  0x9e   :  { %v258_v49 = vadd.f32 %v257_v52, %v256_v60  }
  0x9f LB: > { %v3851_v20 = vld [vmem:[#allocation39_spill] sm:$0xff]  ;;  %v3852_v18 = vld [vmem:[#allocation37_spill] sm:$0xff]  ;;  %v3758_v60 = vmov 0   ;;  %vm2891_vm0 = vmmov 0   ;;  %vm486_vm1 = vcmask 261120   ;;  %s2892_s5 = smov 96   ;;  %v2871_v49 = vphi %v258_v49, %v3924_v49   ;;  %v2867_v59 = vphi %v261_v59, %v3923_v59   ;;  %s2875_s3 = sphi %s3271_s3, %s267_s3  }
  0xa0   : > { %v3853_v16 = vld [vmem:[#allocation35_spill] sm:$0xff]  ;;  %v3854_v14 = vld [vmem:[#allocation33_spill] sm:$0xff]  ;;  %431 = vmatprep.mubr.bf16.mxu0 %v3758_v60  ;;  %v3863_v3 = vld [vmem:[#allocation22_spill] sm:$0xff]  ;;  %vm534_vm2 = vcmask 64512   ;;  %s2893_s7 = smov 64   ;;  %vm550_vm3 = vcmask 1043456  }
  0xa1   : > { %v3855_v12 = vld [vmem:[#allocation31_spill] sm:$0xff]  ;;  %v3856_v10 = vld [vmem:[#allocation29_spill] sm:$0xff]  ;;  %v3864_v1 = vld [vmem:[#allocation20_spill] sm:$0xff]  ;;  %s2894_s9 = smov 32   ;;  %s267_s3 = sadd.s32 1, %s2875_s3  }
  0xa2   : > { %v3857_v8 = vld [vmem:[#allocation27_spill] sm:$0xff]  ;;  %v3858_v6 = vld [vmem:[#allocation25_spill] sm:$0xff]  ;;  %v2237_v52 = vcombine.high %v3855_v12, %v3854_v14  ;;  %v3865_v7 = vld [vmem:[#allocation26_spill] sm:$0xff]  ;;  %p264_p6 = scmp.ge.s32.totalorder %s267_s3, 2  }
  0xa3   : > { %v3859_v4 = vld [vmem:[#allocation23_spill] sm:$0xff]  ;;  %v3860_v2 = vld [vmem:[#allocation21_spill] sm:$0xff]  ;;  %v2234_v58 = vcombine.high %v3857_v8, %v3856_v10  ;;  %v2233_v61 = vcombine.low %v3857_v8, %v3856_v10  ;;  %v3866_v5 = vld [vmem:[#allocation24_spill] sm:$0xff] }
  0xa4   : > { %v3861_v0 = vld [vmem:[#allocation19_spill] sm:$0xff]  ;;  %v2231_v55 = vcombine.high %v3859_v4, %v3858_v6  ;;  %v2230_v57 = vcombine.low %v3859_v4, %v3858_v6  ;;  %v3867_v11 = vld [vmem:[#allocation30_spill] sm:$0xff]  ;;  %v3868_v9 = vld [vmem:[#allocation28_spill] sm:$0xff] }
  0xa5   : > { %v2228_v50 = vcombine.high %v3861_v0, %v3860_v2  ;;  %v2227_v54 = vcombine.low %v3861_v0, %v3860_v2  ;;  %v3869_v15 = vld [vmem:[#allocation34_spill] sm:$0xff]  ;;  %v3870_v13 = vld [vmem:[#allocation32_spill] sm:$0xff] }
  0xa6   : > { %v3871_v19 = vld [vmem:[#allocation38_spill] sm:$0xff]  ;;  %v3872_v17 = vld [vmem:[#allocation36_spill] sm:$0xff] }
  0xa7   : > { %399 = vmatprep.subr.bf16.mxu0 %v2228_v50  ;;  %v2236_v50 = vcombine.low %v3855_v12, %v3854_v14 }
  0xa8   : > { %400 = vmatpush1.bf16.msra.mxu0 %v2227_v54  ;;  %v2240_v54 = vcombine.high %v3853_v16, %v3852_v18 }
  0xa9   : > { %401 = vmatprep.subr.bf16.mxu0 %v2231_v55  ;;  %v2239_v55 = vcombine.low %v3853_v16, %v3852_v18 }
  0xac   : > { %402 = vmatpush1.bf16.msra.mxu0 %v2230_v57  ;;  %v2243_v57 = vcombine.high %v3851_v20, %v3093_v22 }
  0xad   : > { %403 = vmatprep.subr.bf16.mxu0 %v2234_v58  ;;  %v2242_v58 = vcombine.low %v3851_v20, %v3093_v22 }
  0xb0   : > { %404 = vmatpush1.bf16.msra.mxu0 %v2233_v61  ;;  %v2246_v61 = vcombine.high %v3097_v24, %v3101_v26 }
  0xb1   : > { %405 = vmatprep.subr.bf16.mxu0 %v2237_v52  ;;  %v2245_v52 = vcombine.low %v3097_v24, %v3101_v26 }
  0xb4   : > { %406 = vmatpush1.bf16.msra.mxu0 %v2236_v50  ;;  %v2249_v50 = vcombine.high %v3105_v28, %v3109_v30 }
  0xb5   : > { %407 = vmatprep.subr.bf16.mxu0 %v2240_v54  ;;  %v2248_v54 = vcombine.low %v3105_v28, %v3109_v30 }
  0xb8   : > { %408 = vmatpush1.bf16.msra.mxu0 %v2239_v55  ;;  %v270_v55 = vpack.c.bf16 %v2867_v59, %v2871_v49 }
  0xb9   : > { %409 = vmatprep.subr.bf16.mxu0 %v2243_v57  ;;  %v3760_v57 = vmov 0.0  }
  0xba   : > { %2402 = vmatprep.subr.bf16.mxu1 %v3760_v57  ;;  %2418 = vmatprep.mubr.msk.bf16.mxu1 %vm2891_vm0, %v3760_v57 }
  0xbc   : > { %410 = vmatpush1.bf16.msra.mxu0 %v2242_v58 }
  0xbd   : > { %411 = vmatprep.subr.bf16.mxu0 %v2246_v61 }
  0xc0   : > { %412 = vmatpush1.bf16.msra.mxu0 %v2245_v52 }
  0xc1   : > { %413 = vmatprep.subr.bf16.mxu0 %v2249_v50 }
  0xc4   : > { %414 = vmatpush1.bf16.msra.mxu0 %v2248_v54 }
  0xc5   : > { %2422 = vmatprep.subr.bf16.mxu0 %v3760_v57 }
  0xc7   : > { %432 = vmatmul.mubr.bf16.vlgmr.msra.gmra.mrb[0].mxu0 %v270_v55 }
  0xc8   : > { %2424 = vmatprep.mubr.msk.bf16.mxu0 %vm2891_vm0, %v3760_v57 }
 0x19a   : > { %v433_v58 = vpop.f32.mrb[0].mxu0 }
 0x19b   : > { %v435_v61 = vpop.f32.mrb[1].mxu0  ;;  %v434_v60 = vadd.f32 %v433_v58, %v3252_v63  ;;  %v2229_v58 = vcombine.low %v3864_v1, %v3863_v3  ;;  %v2247_v3 = vcombine.low %v3099_v25, %v3103_v27 }
 0x19c   : > { %v436_v52 = vadd.f32 %v435_v61, %v3254_v39  ;;  %v3324_v50 = vpop.f32.mrb[2].mxu0  ;;  %v3862_v61 = vmov 0.0  }
 0x19d   : > { %v3326_v54 = vpop.f32.mrb[3].mxu0  ;;  %v3335_v2 = vpack.c.bf16 %v434_v60, %v434_v60  ;;  %2403 = vmatpush3.bf16.msra.mxu1 %v2229_v58  ;;  %v2235_v60 = vcombine.low %v3868_v9, %v3867_v11  ;;  %v2241_v58 = vcombine.low %v3872_v17, %v3871_v19 }
 0x19e   : > { %v3329_v0 = vpack.c.bf16 %v436_v52, %v436_v52  ;;  %2404 = vmatprep.subr.bf16.mxu1 %v3862_v61  ;;  %v2238_v52 = vcombine.low %v3870_v13, %v3869_v15 }
 0x1a0   : > { %599 = vrot.lane.b32.xlu0 %v3329_v0, %s2892_s5  ;;  %v491_v57 = vsel %vm486_vm1, %v3329_v0, 0 }
 0x1a1   : > { %2423 = vmatpush3.bf16.xpose.msra.mxu0 %v491_v57  ;;  %v2232_v57 = vcombine.low %v3866_v5, %v3865_v7 }
 0x1a2   : > { %2434 = vmatprep.subr.bf16.mxu0 %v3862_v61 }
 0x1a3   : > { %2405 = vmatpush3.bf16.msra.mxu1 %v2232_v57  ;;  %v2244_v57 = vcombine.low %v3091_v21, %v3095_v23 }
 0x1a4   : > { %596 = vrot.lane.b32.xlu0 %v3335_v2, %s2892_s5  ;;  %2406 = vmatprep.subr.bf16.mxu1 %v3862_v61 }
 0x1a7   : > { %2407 = vmatpush3.bf16.msra.mxu1 %v2235_v60 }
 0x1a8   : > { %2425 = vmatmul.mubr.msk.bf16.vlgmr.msra.gmra.mrb[4].mxu0 %vm486_vm1, %v3335_v2  ;;  %2408 = vmatprep.subr.bf16.mxu1 %v3862_v61 }
 0x1a9   : > { %2436 = vmatprep.mubr.msk.bf16.mxu0 %vm2891_vm0, %v3862_v61 }
 0x1ab   : > { %2409 = vmatpush3.bf16.msra.mxu1 %v2238_v52  ;;  %v2250_v52 = vcombine.low %v3107_v29, %v3111_v31 }
 0x1ac   : > { %2410 = vmatprep.subr.bf16.mxu1 %v3862_v61 }
 0x1af   : > { %2411 = vmatpush3.bf16.msra.mxu1 %v2241_v58 }
 0x1b0   : > { %2412 = vmatprep.subr.bf16.mxu1 %v3862_v61 }
 0x1b3   : > { %2413 = vmatpush3.bf16.msra.mxu1 %v2244_v57 }
 0x1b4   : > { %2414 = vmatprep.subr.bf16.mxu1 %v3862_v61 }
 0x1b7   : > { %2415 = vmatpush3.bf16.msra.mxu1 %v2247_v3 }
 0x1b8   : > { %2416 = vmatprep.subr.bf16.mxu1 %v3862_v61 }
 0x1bb   : > { %2417 = vmatpush3.bf16.msra.mxu1 %v2250_v52 }
 0x1bc   : > { %2428 = vmatprep.subr.bf16.mxu1 %v3862_v61 }
 0x1be   : > { %2419 = vmatmul.mubr.bf16.vlgmr.msra.gmra.mrb[0].mxu1 %v270_v55 }
 0x1bf   : > { %2430 = vmatprep.mubr.msk.bf16.mxu1 %vm2891_vm0, %v3862_v61 }
 0x212   : > { %v600_v1 = vpop.permute.xlu0 %599 }
 0x213   : > { %v605_v60 = vsel %vm486_vm1, %v600_v1, 0 }
 0x214   : > { %2435 = vmatpush3.bf16.xpose.msra.mxu0 %v605_v60 }
 0x215   : > { %2446 = vmatprep.subr.bf16.mxu0 %v3862_v61 }
 0x216   : > { %v597_v58 = vpop.permute.xlu0 %596 }
 0x21b   : > { %2437 = vmatmul.mubr.msk.bf16.vlgmr.msra.gmra.mrb[8].mxu0 %vm486_vm1, %v597_v58 }
 0x21c   : > { %2450 = vmatprep.mubr.msk.bf16.mxu0 %vm2891_vm0, %v3862_v61 }
 0x27b   : > { %v527_v1 = vpop.f32.mrb[4].mxu0 }
 0x27c   : > { %v533_v3 = vmul.f32 0.17677669, %v527_v1  ;;  %v2426_v57 = vpop.f32.mrb[5].mxu0 }
 0x27d   : > { %v530_v60 = vpop.f32.mrb[6].mxu0 }
 0x27e   : > { %v2427_v4 = vpop.f32.mrb[7].mxu0  ;;  %v535_v5 = vsel %vm534_vm2, %v533_v3, -inf }
 0x27f   : > { %536 = vmax.xlane.f32.xlu1 %v535_v5 }
 0x291   : > { %v476_v12 = vpop.f32.mrb[0].mxu1 }
 0x292   : > { %v2420_v1 = vpop.f32.mrb[1].mxu1  ;;  %v477_v5 = vadd.f32 %v476_v12, %v3256_v53 }
 0x293   : > { %v3379_v60 = vpop.f32.mrb[2].mxu1 }
 0x2ee   : > { %v641_v58 = vpop.f32.mrb[8].mxu0 }
 0x2ef   : > { %v647_v6 = vmul.f32 0.17677669, %v641_v58  ;;  %v2438_v7 = vpop.f32.mrb[9].mxu0 }
 0x2f0   : > { %v644_v8 = vpop.f32.mrb[10].mxu0  ;;  %v3381_v7 = vpack.c.bf16 %v477_v5, %v477_v5  ;;  %v3405_v5 = vcombine.low %v3125_v38, %v3127_v40 }
 0x2f1   : > { %v2439_v52 = vpop.f32.mrb[11].mxu0  ;;  %v648_v9 = vsel %vm534_vm2, %v647_v6, -inf  ;;  %v2421_v8 = vpop.f32.mrb[3].mxu1 }
 0x2f2   : > { %649 = vmax.xlane.f32.xlu1 %v648_v9  ;;  %v552_v9 = vsel %vm550_vm3, %v3381_v7, 0 }
 0x2f3   : > { %2429 = vmatpush3.bf16.msra.mxu1 %v552_v9 }
 0x2f4   : > { %2440 = vmatprep.subr.bf16.mxu1 %v3862_v61 }
 0x30c   : > { %v537_v55 = vpop.xlane.xlu1 %536 }
 0x30d   : > { %v538_v10 = vsub.f32 %v533_v3, %v537_v55 }
 0x30f   : > { %v539_v11 = vmul.f32 1.442695, %v538_v10 }
 0x311   : > { %2649 = vpow2.f32 %v539_v11 }
 0x31b   : > { %v2650_v57 = vpop.eup %2649 }
 0x31c   : > { %v541_v4 = vsel %vm534_vm2, %v2650_v57, 0.0 }
 0x31d   : > { %542 = vadd.xlane.f32.xlu0 %v541_v4  ;;  %v3400_v4 = vcombine.low %v3121_v36, %v3123_v37 }
 0x31f   : > { %2447 = vmatpush3.bf16.msra.mxu0 %v3400_v4 }
 0x320   : > { %2448 = vmatprep.subr.bf16.mxu0 %v3862_v61 }
 0x323   : > { %2449 = vmatpush3.bf16.msra.mxu0 %v3405_v5 }
 0x324   : > { %2462 = vmatprep.subr.bf16.mxu0 %v3862_v61 }
 0x333   : > { %883 = vrot.lane.b32.xlu0 %v3381_v7, %s2893_s7 }
 0x37f   : > { %v650_v10 = vpop.xlane.xlu1 %649 }
 0x380   : > { %v651_v11 = vsub.f32 %v647_v6, %v650_v10 }
 0x382   : > { %v652_v3 = vmul.f32 1.442695, %v651_v11 }
 0x384   : > { %2651 = vpow2.f32 %v652_v3  ;;  %v3414_v3 = vcombine.low %v3113_v32, %v3115_v33 }
 0x38e   : > { %v2652_v12 = vpop.eup %2651 }
 0x38f   : > { %v654_v58 = vsel %vm534_vm2, %v2652_v12, 0.0 }
 0x390   : > { %655 = vadd.xlane.f32.xlu1 %v654_v58 }
 0x3a1   : > { %661 = vrot.lane.b32.xlu1 %v3381_v7, %s2892_s5 }
 0x3a5   : > { %822 = vrot.lane.b32.xlu1 %v3329_v0, %s2893_s7 }
 0x3a9   : > { %820 = vrot.lane.b32.xlu1 %v3335_v2, %s2893_s7 }
 0x3aa   : > { %v543_v52 = vpop.xlane.xlu0 %542 }
 0x3ab   : > { %2653 = vrcp.f32 %v543_v52  ;;  %v3420_v52 = vcombine.low %v3117_v34, %v3119_v35 }
 0x3b5   : > { %v2654_v55 = vpop.eup %2653 }
 0x3b6   : > { %v545_v1 = vmul.f32 %v2654_v55, %v2650_v57 }
 0x3b8   : > { %v546_v6 = vpack.c.bf16 %v545_v1, %v545_v1 }
 0x3ba   : > { %2431 = vmatmul.mubr.msk.bf16.vlgmr.msra.gmra.mrb[4].mxu1 %vm534_vm2, %v546_v6 }
 0x3bb   : > { %2442 = vmatprep.mubr.msk.bf16.mxu1 %vm2891_vm0, %v3862_v61 }
 0x41d   : > { %v656_v57 = vpop.xlane.xlu1 %655 }
 0x41e   : > { %2655 = vrcp.f32 %v656_v57 }
 0x421   : > { %v662_v8 = vpop.permute.xlu1 %661 }
 0x422   : > { %v667_v9 = vsel %vm550_vm3, %v662_v8, 0 }
 0x423   : > { %2441 = vmatpush3.bf16.msra.mxu1 %v667_v9 }
 0x424   : > { %2454 = vmatprep.subr.bf16.mxu1 %v3862_v61 }
 0x428   : > { %v2656_v10 = vpop.eup %2655 }
 0x429   : > { %v658_v11 = vmul.f32 %v2656_v10, %v2652_v12  ;;  %v884_v12 = vpop.permute.xlu0 %883  ;;  %v823_v10 = vpop.permute.xlu1 %822 }
 0x42a   : > { %v889_v8 = vsel %vm550_vm3, %v884_v12, 0 }
 0x42b   : > { %v659_v58 = vpack.c.bf16 %v658_v11, %v658_v11 }
 0x42d   : > { %2443 = vmatmul.mubr.msk.bf16.vlgmr.msra.gmra.mrb[8].mxu1 %vm534_vm2, %v659_v58  ;;  %v821_v12 = vpop.permute.xlu1 %820 }
 0x42e   : > { %2455 = vmatpush3.bf16.msra.mxu1 %v3414_v3  ;;  %2458 = vmatprep.mubr.msk.bf16.mxu1 %vm2891_vm0, %v3862_v61 }
 0x42f   : > { %2456 = vmatprep.subr.bf16.mxu1 %v3862_v61 }
 0x432   : > { %2457 = vmatpush3.bf16.msra.mxu1 %v3420_v52 }
 0x433   : > { %2468 = vmatprep.subr.bf16.mxu1 %v3862_v61 }
 0x48d   : > { %v588_v55 = vpop.f32.mrb[4].mxu1 }
 0x48e   : > { %v594_v1 = vpack.c.bf16 %v588_v55, %v588_v55  ;;  %v2432_v6 = vpop.f32.mrb[5].mxu1  ;;  %v828_v55 = vsel %vm486_vm1, %v823_v10, 0 }
 0x48f   : > { %v591_v57 = vpop.f32.mrb[6].mxu1 }
 0x490   : > { %v2433_v9 = vpop.f32.mrb[7].mxu1  ;;  %2459 = vmatmul.mubr.msk.bf16.vlgmr.msra.gmra.mrb[12].mxu1 %vm486_vm1, %v594_v1 }
 0x491   : > { %2469 = vmatpush3.bf16.msra.mxu1 %v889_v8  ;;  %2470 = vmatprep.mubr.msk.bf16.mxu1 %vm2891_vm0, %v3862_v61 }
 0x492   : > { %2482 = vmatprep.subr.bf16.mxu1 %v3862_v61 }
 0x500   : > { %v703_v11 = vpop.f32.mrb[8].mxu1 }
 0x501   : > { %v709_v58 = vpack.c.bf16 %v703_v11, %v703_v11  ;;  %v2444_v13 = vpop.f32.mrb[9].mxu1 }
 0x502   : > { %v706_v14 = vpop.f32.mrb[10].mxu1 }
 0x503   : > { %v2445_v6 = vpop.f32.mrb[11].mxu1  ;;  %2451 = vmatmul.mubr.msk.bf16.vlgmr.msra.gmra.mrb[12].mxu0 %vm486_vm1, %v709_v58 }
 0x504   : > { %2463 = vmatpush3.bf16.xpose.msra.mxu0 %v828_v55  ;;  %2464 = vmatprep.mubr.msk.bf16.mxu0 %vm2891_vm0, %v3862_v61 }
 0x505   : > { %2474 = vmatprep.subr.bf16.mxu0 %v3862_v61 }
 0x50b   : > { %2465 = vmatmul.mubr.msk.bf16.vlgmr.msra.gmra.mrb[16].mxu0 %vm486_vm1, %v821_v12 }
 0x50c   : > { %2478 = vmatprep.mubr.msk.bf16.mxu0 %vm2891_vm0, %v3862_v61 }
 0x563   : > { %v814_v1 = vpop.f32.mrb[12].mxu1 }
 0x564   : > { %v2460_v13 = vpop.f32.mrb[13].mxu1 }
 0x565   : > { %v817_v14 = vpop.f32.mrb[14].mxu1 }
 0x566   : > { %v2461_v57 = vpop.f32.mrb[15].mxu1 }
 0x5d6   : > { %v759_v8 = vpop.f32.mrb[12].mxu0 }
 0x5d7   : > { %v3440_v9 = vadd.f32 %v814_v1, %v759_v8  ;;  %v2452_v10 = vpop.f32.mrb[13].mxu0 }
 0x5d8   : > { %v762_v11 = vpop.f32.mrb[14].mxu0 }
 0x5d9   : > { %v2453_v58 = vpop.f32.mrb[15].mxu0 }
 0x5de   : > { %v864_v55 = vpop.f32.mrb[16].mxu0 }
 0x5df   : > { %v870_v6 = vmul.f32 0.17677669, %v864_v55  ;;  %v2466_v15 = vpop.f32.mrb[17].mxu0 }
 0x5e0   : > { %v867_v16 = vpop.f32.mrb[18].mxu0  ;;  %v3450_v15 = vcombine.low %v3129_v41, %v3131_v42 }
 0x5e1   : > { %v2467_v17 = vpop.f32.mrb[19].mxu0  ;;  %v871_v12 = vsel %vm534_vm2, %v870_v6, -inf }
 0x5e2   : > { %872 = vmax.xlane.f32.xlu1 %v871_v12  ;;  %2475 = vmatpush3.bf16.msra.mxu0 %v3450_v15 }
 0x5e3   : > { %2476 = vmatprep.subr.bf16.mxu0 %v3862_v61 }
 0x66f   : > { %v873_v18 = vpop.xlane.xlu1 %872 }
 0x670   : > { %v874_v19 = vsub.f32 %v870_v6, %v873_v18 }
 0x672   : > { %v875_v20 = vmul.f32 1.442695, %v874_v19 }
 0x674   : > { %2657 = vpow2.f32 %v875_v20 }
 0x67e   : > { %v2658_v13 = vpop.eup %2657 }
 0x67f   : > { %v877_v14 = vsel %vm534_vm2, %v2658_v13, 0.0 }
 0x680   : > { %878 = vadd.xlane.f32.xlu0 %v877_v14 }
 0x696   : > { %990 = vrot.lane.b32.xlu0 %v3329_v0, %s2894_s9 }
 0x69a   : > { %988 = vrot.lane.b32.xlu0 %v3335_v2, %s2894_s9  ;;  %v3464_v2 = vcombine.low %v3133_v43, %v3135_v44 }
 0x69c   : > { %2477 = vmatpush3.bf16.msra.mxu0 %v3464_v2 }
 0x69d   : > { %2488 = vmatprep.subr.bf16.mxu0 %v3862_v61 }
 0x70d   : > { %v879_v16 = vpop.xlane.xlu0 %878 }
 0x70e   : > { %2659 = vrcp.f32 %v879_v16 }
 0x711   : > { %v991_v19 = vpop.permute.xlu0 %990 }
 0x712   : > { %v996_v1 = vsel %vm486_vm1, %v991_v19, 0 }
 0x715   : > { %v989_v0 = vpop.permute.xlu0 %988 }
 0x718   : > { %v2660_v17 = vpop.eup %2659 }
 0x719   : > { %v881_v18 = vmul.f32 %v2660_v17, %v2658_v13 }
 0x71b   : > { %v882_v20 = vpack.c.bf16 %v881_v18, %v881_v18 }
 0x71d   : > { %2471 = vmatmul.mubr.msk.bf16.vlgmr.msra.gmra.mrb[16].mxu1 %vm534_vm2, %v882_v20 }
 0x71e   : > { %2483 = vmatpush3.bf16.xpose.msra.mxu1 %v996_v1  ;;  %2484 = vmatprep.mubr.msk.bf16.mxu1 %vm2891_vm0, %v3862_v61 }
 0x71f   : > { %2494 = vmatprep.subr.bf16.mxu1 %v3862_v61 }
 0x725   : > { %2485 = vmatmul.mubr.msk.bf16.vlgmr.msra.gmra.mrb[20].mxu1 %vm486_vm1, %v989_v0  ;;  %v440_v0 = vadd.f32 %v3326_v54, %v3254_v39 }
 0x726   : > { %2498 = vmatprep.mubr.msk.bf16.mxu1 %vm2891_vm0, %v3862_v61 }
 0x7f0   : > { %v925_v57 = vpop.f32.mrb[16].mxu1 }
 0x7f1   : > { %v931_v8 = vpack.c.bf16 %v925_v57, %v925_v57  ;;  %v2472_v10 = vpop.f32.mrb[17].mxu1  ;;  %v438_v57 = vadd.f32 %v3324_v50, %v3252_v63 }
 0x7f2   : > { %v928_v11 = vpop.f32.mrb[18].mxu1 }
 0x7f3   : > { %v2473_v58 = vpop.f32.mrb[19].mxu1  ;;  %2479 = vmatmul.mubr.msk.bf16.vlgmr.msra.gmra.mrb[20].mxu0 %vm486_vm1, %v931_v8  ;;  %v3479_v8 = vpack.c.bf16 %v440_v0, %v440_v0  ;;  %v3483_v10 = vpack.c.bf16 %v438_v57, %v438_v57  ;;  %v480_v0 = vadd.f32 %v3379_v60, %v3256_v53 }
 0x7f4   : > { %2490 = vmatprep.mubr.msk.bf16.mxu0 %vm2891_vm0, %v3862_v61 }
 0x7f5   : > { %v3525_v57 = vpack.c.bf16 %v480_v0, %v480_v0 }
 0x7f8   : > { %v1032_v55 = vpop.f32.mrb[20].mxu1 }
 0x7f9   : > { %v1038_v6 = vmul.f32 0.17677669, %v1032_v55  ;;  %v2486_v12 = vpop.f32.mrb[21].mxu1 }
 0x7fa   : > { %v1035_v13 = vpop.f32.mrb[22].mxu1 }
 0x7fb   : > { %v2487_v14 = vpop.f32.mrb[23].mxu1  ;;  %v1039_v16 = vsel %vm534_vm2, %v1038_v6, -inf }
 0x7fc   : > { %1040 = vmax.xlane.f32.xlu0 %v1039_v16 }
 0x889   : > { %v1041_v17 = vpop.xlane.xlu0 %1040 }
 0x88a   : > { %v1042_v18 = vsub.f32 %v1038_v6, %v1041_v17  ;;  %v3497_v6 = vcombine.low %v3141_v47, %v3143_v48 }
 0x88c   : > { %v1043_v19 = vmul.f32 1.442695, %v1042_v18  ;;  %v1163_v18 = vsel %vm486_vm1, %v3479_v8, 0 }
 0x88e   : > { %2661 = vpow2.f32 %v1043_v19 }
 0x898   : > { %v2662_v20 = vpop.eup %2661 }
 0x899   : > { %v1045_v1 = vsel %vm534_vm2, %v2662_v20, 0.0 }
 0x89a   : > { %1046 = vadd.xlane.f32.xlu1 %v1045_v1 }
 0x8ab   : > { %1051 = vrot.lane.b32.xlu1 %v3381_v7, %s2894_s9  ;;  %v3492_v7 = vcombine.low %v3137_v45, %v3139_v46 }
 0x8ad   : > { %2495 = vmatpush3.bf16.msra.mxu1 %v3492_v7 }
 0x8ae   : > { %2496 = vmatprep.subr.bf16.mxu1 %v3862_v61 }
 0x8af   : > { %1269 = vrot.lane.b32.xlu1 %v3479_v8, %s2892_s5 }
 0x8b1   : > { %2497 = vmatpush3.bf16.msra.mxu1 %v3497_v6 }
 0x8b2   : > { %2508 = vmatprep.subr.bf16.mxu1 %v3862_v61 }
 0x8b3   : > { %1266 = vrot.lane.b32.xlu1 %v3483_v10, %s2892_s5 }
 0x8c6   : > { %v981_v11 = vpop.f32.mrb[20].mxu0 }
 0x8c7   : > { %v3488_v58 = vadd.f32 %v981_v11, %v3440_v9  ;;  %v2480_v54 = vpop.f32.mrb[21].mxu0 }
 0x8c8   : > { %v984_v50 = vpop.f32.mrb[22].mxu0 }
 0x8c9   : > { %v2481_v55 = vpop.f32.mrb[23].mxu0 }
 0x927   : > { %v1047_v9 = vpop.xlane.xlu1 %1046 }
 0x928   : > { %2663 = vrcp.f32 %v1047_v9 }
 0x92b   : > { %v1052_v12 = vpop.permute.xlu1 %1051 }
 0x92c   : > { %v1057_v13 = vsel %vm550_vm3, %v1052_v12, 0 }
 0x92d   : > { %2489 = vmatpush3.bf16.msra.mxu0 %v1057_v13 }
 0x92e   : > { %2502 = vmatprep.subr.bf16.mxu0 %v3862_v61 }
 0x92f   : > { %v1270_v19 = vpop.permute.xlu1 %1269 }
 0x930   : > { %v1275_v1 = vsel %vm486_vm1, %v1270_v19, 0 }
 0x932   : > { %v2664_v14 = vpop.eup %2663 }
 0x933   : > { %v1049_v16 = vmul.f32 %v2664_v14, %v2662_v20  ;;  %v1267_v20 = vpop.permute.xlu1 %1266 }
 0x935   : > { %v1050_v17 = vpack.c.bf16 %v1049_v16, %v1049_v16 }
 0x937   : > { %2491 = vmatmul.mubr.msk.bf16.vlgmr.msra.gmra.mrb[24].mxu0 %vm534_vm2, %v1050_v17 }
 0x938   : > { %2503 = vmatpush3.bf16.xpose.msra.mxu0 %v1163_v18  ;;  %2504 = vmatprep.mubr.msk.bf16.mxu0 %vm2891_vm0, %v3862_v61 }
 0x939   : > { %2514 = vmatprep.subr.bf16.mxu0 %v3862_v61 }
 0x93f   : > { %2505 = vmatmul.mubr.msk.bf16.vlgmr.msra.gmra.mrb[28].mxu0 %vm486_vm1, %v3483_v10 }
 0x940   : > { %2515 = vmatpush3.bf16.xpose.msra.mxu0 %v1275_v1  ;;  %2516 = vmatprep.mubr.msk.bf16.mxu0 %vm2891_vm0, %v3862_v61 }
 0x941   : > { %2526 = vmatprep.subr.bf16.mxu0 %v3862_v61 }
 0x947   : > { %2517 = vmatmul.mubr.msk.bf16.vlgmr.msra.gmra.mrb[32].mxu0 %vm486_vm1, %v1267_v20 }
 0x948   : > { %2527 = vmatpush3.bf16.msra.mxu0 %v3400_v4  ;;  %2530 = vmatprep.mubr.msk.bf16.mxu0 %vm2891_vm0, %v3862_v61  ;;  %v1222_v4 = vsel %vm550_vm3, %v3525_v57, 0 }
 0x949   : > { %2528 = vmatprep.subr.bf16.mxu0 %v3862_v61 }
 0x94c   : > { %2529 = vmatpush3.bf16.msra.mxu0 %v3405_v5 }
 0x94d   : > { %2542 = vmatprep.subr.bf16.mxu0 %v3862_v61 }
 0xa0a   : > { %v1093_v11 = vpop.f32.mrb[24].mxu0 }
 0xa0b   : > { %v1099_v54 = vpack.c.bf16 %v1093_v11, %v1093_v11  ;;  %v2492_v50 = vpop.f32.mrb[25].mxu0 }
 0xa0c   : > { %v1096_v55 = vpop.f32.mrb[26].mxu0 }
 0xa0d   : > { %v2493_v9 = vpop.f32.mrb[27].mxu0  ;;  %2499 = vmatmul.mubr.msk.bf16.vlgmr.msra.gmra.mrb[24].mxu1 %vm486_vm1, %v1099_v54 }
 0xa0e   : > { %2509 = vmatpush3.bf16.msra.mxu1 %v1222_v4  ;;  %2510 = vmatprep.mubr.msk.bf16.mxu1 %vm2891_vm0, %v3862_v61 }
 0xa0f   : > { %2520 = vmatprep.subr.bf16.mxu1 %v3862_v61 }
 0xa12   : > { %v1199_v5 = vpop.f32.mrb[28].mxu0 }
 0xa13   : > { %v1205_v60 = vmul.f32 0.17677669, %v1199_v5  ;;  %v2506_v12 = vpop.f32.mrb[29].mxu0 }
 0xa14   : > { %v1202_v13 = vpop.f32.mrb[30].mxu0 }
 0xa15   : > { %v2507_v14 = vpop.f32.mrb[31].mxu0  ;;  %v1206_v16 = vsel %vm534_vm2, %v1205_v60, -inf }
 0xa16   : > { %1207 = vmax.xlane.f32.xlu1 %v1206_v16 }
 0xa1a   : > { %v1311_v17 = vpop.f32.mrb[32].mxu0 }
 0xa1b   : > { %v1317_v18 = vmul.f32 0.17677669, %v1311_v17  ;;  %v2518_v19 = vpop.f32.mrb[33].mxu0 }
 0xa1c   : > { %v1314_v1 = vpop.f32.mrb[34].mxu0 }
 0xa1d   : > { %v2519_v20 = vpop.f32.mrb[35].mxu0  ;;  %v1318_v0 = vsel %vm534_vm2, %v1317_v18, -inf }
 0xa1e   : > { %1319 = vmax.xlane.f32.xlu0 %v1318_v0 }
 0xa27   : > { %1466 = vrot.lane.b32.xlu1 %v3483_v10, %s2893_s7 }
 0xaa3   : > { %v1208_v11 = vpop.xlane.xlu1 %1207 }
 0xaa4   : > { %v1209_v54 = vsub.f32 %v1205_v60, %v1208_v11 }
 0xaa6   : > { %v1210_v50 = vmul.f32 1.442695, %v1209_v54 }
 0xaa8   : > { %2665 = vpow2.f32 %v1210_v50 }
 0xaab   : > { %v1320_v55 = vpop.xlane.xlu0 %1319 }
 0xaac   : > { %v1321_v9 = vsub.f32 %v1317_v18, %v1320_v55 }
 0xaae   : > { %v1322_v4 = vmul.f32 1.442695, %v1321_v9 }
 0xab0   : > { %2667 = vpow2.f32 %v1322_v4 }
 0xab2   : > { %v2666_v5 = vpop.eup %2665 }
 0xab3   : > { %v1212_v12 = vsel %vm534_vm2, %v2666_v5, 0.0 }
 0xab4   : > { %1213 = vadd.xlane.f32.xlu0 %v1212_v12 }
 0xaba   : > { %v2668_v13 = vpop.eup %2667 }
 0xabb   : > { %v1324_v14 = vsel %vm534_vm2, %v2668_v13, 0.0 }
 0xabc   : > { %1325 = vadd.xlane.f32.xlu0 %v1324_v14 }
 0xad2   : > { %1331 = vrot.lane.b32.xlu0 %v3525_v57, %s2892_s5 }
 0xad6   : > { %1468 = vrot.lane.b32.xlu0 %v3479_v8, %s2893_s7 }
 0xae0   : > { %v1149_v60 = vpop.f32.mrb[24].mxu1 }
 0xae1   : > { %v3544_v16 = vadd.f32 %v1149_v60, %v3488_v58  ;;  %v2500_v17 = vpop.f32.mrb[25].mxu1 }
 0xae2   : > { %v1152_v18 = vpop.f32.mrb[26].mxu1 }
 0xae3   : > { %v2501_v19 = vpop.f32.mrb[27].mxu1 }
 0xb41   : > { %v1214_v1 = vpop.xlane.xlu0 %1213 }
 0xb42   : > { %2669 = vrcp.f32 %v1214_v1 }
 0xb49   : > { %v1326_v20 = vpop.xlane.xlu0 %1325 }
 0xb4a   : > { %2671 = vrcp.f32 %v1326_v20 }
 0xb4c   : > { %v2670_v0 = vpop.eup %2669 }
 0xb4d   : > { %v1216_v11 = vmul.f32 %v2670_v0, %v2666_v5  ;;  %v1332_v54 = vpop.permute.xlu0 %1331  ;;  %v1467_v0 = vpop.permute.xlu1 %1466 }
 0xb4e   : > { %v1337_v55 = vsel %vm550_vm3, %v1332_v54, 0 }
 0xb4f   : > { %v1217_v50 = vpack.c.bf16 %v1216_v11, %v1216_v11 }
 0xb51   : > { %2511 = vmatmul.mubr.msk.bf16.vlgmr.msra.gmra.mrb[28].mxu1 %vm534_vm2, %v1217_v50 }
 0xb52   : > { %2521 = vmatpush3.bf16.msra.mxu1 %v1337_v55  ;;  %2522 = vmatprep.mubr.msk.bf16.mxu1 %vm2891_vm0, %v3862_v61 }
 0xb53   : > { %2534 = vmatprep.subr.bf16.mxu1 %v3862_v61 }
 0xb54   : > { %v2672_v58 = vpop.eup %2671 }
 0xb55   : > { %v1328_v9 = vmul.f32 %v2672_v58, %v2668_v13 }
 0xb57   : > { %v1329_v4 = vpack.c.bf16 %v1328_v9, %v1328_v9 }
 0xb59   : > { %2523 = vmatmul.mubr.msk.bf16.vlgmr.msra.gmra.mrb[32].mxu1 %vm534_vm2, %v1329_v4 }
 0xb5a   : > { %2535 = vmatpush3.bf16.msra.mxu1 %v3414_v3  ;;  %2538 = vmatprep.mubr.msk.bf16.mxu1 %vm2891_vm0, %v3862_v61  ;;  %v1469_v3 = vpop.permute.xlu0 %1468 }
 0xb5b   : > { %2536 = vmatprep.subr.bf16.mxu1 %v3862_v61  ;;  %v1474_v20 = vsel %vm486_vm1, %v1469_v3, 0 }
 0xb5e   : > { %2537 = vmatpush3.bf16.msra.mxu1 %v3420_v52 }
 0xb5f   : > { %2548 = vmatprep.subr.bf16.mxu1 %v3862_v61 }
 0xc24   : > { %v1258_v5 = vpop.f32.mrb[28].mxu1 }
 0xc25   : > { %v1264_v12 = vpack.c.bf16 %v1258_v5, %v1258_v5  ;;  %v2512_v14 = vpop.f32.mrb[29].mxu1 }
 0xc26   : > { %v1261_v60 = vpop.f32.mrb[30].mxu1 }
 0xc27   : > { %v2513_v17 = vpop.f32.mrb[31].mxu1  ;;  %2539 = vmatmul.mubr.msk.bf16.vlgmr.msra.gmra.mrb[36].mxu1 %vm486_vm1, %v1264_v12 }
 0xc28   : > { %2550 = vmatprep.mubr.msk.bf16.mxu1 %vm2891_vm0, %v3862_v61 }
 0xc2c   : > { %v1373_v13 = vpop.f32.mrb[32].mxu1 }
 0xc2d   : > { %v1379_v18 = vpack.c.bf16 %v1373_v13, %v1373_v13  ;;  %v2524_v19 = vpop.f32.mrb[33].mxu1 }
 0xc2e   : > { %v1376_v1 = vpop.f32.mrb[34].mxu1 }
 0xc2f   : > { %v2525_v52 = vpop.f32.mrb[35].mxu1  ;;  %2531 = vmatmul.mubr.msk.bf16.vlgmr.msra.gmra.mrb[36].mxu0 %vm486_vm1, %v1379_v18 }
 0xc30   : > { %2543 = vmatpush3.bf16.xpose.msra.mxu0 %v1474_v20  ;;  %2544 = vmatprep.mubr.msk.bf16.mxu0 %vm2891_vm0, %v3862_v61 }
 0xc31   : > { %2554 = vmatprep.subr.bf16.mxu0 %v3862_v61 }
 0xc37   : > { %2545 = vmatmul.mubr.msk.bf16.vlgmr.msra.gmra.mrb[40].mxu0 %vm486_vm1, %v1467_v0 }
 0xc38   : > { %2555 = vmatpush3.bf16.msra.mxu0 %v3450_v15  ;;  %2558 = vmatprep.mubr.msk.bf16.mxu0 %vm2891_vm0, %v3862_v61 }
 0xc39   : > { %2556 = vmatprep.subr.bf16.mxu0 %v3862_v61 }
 0xc3c   : > { %2557 = vmatpush3.bf16.msra.mxu0 %v3464_v2 }
 0xc3d   : > { %2568 = vmatprep.subr.bf16.mxu0 %v3862_v61 }
 0xcfa   : > { %v1460_v11 = vpop.f32.mrb[36].mxu1 }
 0xcfb   : > { %v2540_v54 = vpop.f32.mrb[37].mxu1 }
 0xcfc   : > { %v1463_v50 = vpop.f32.mrb[38].mxu1 }
 0xcfd   : > { %v2541_v55 = vpop.f32.mrb[39].mxu1 }
 0xd02   : > { %v1417_v58 = vpop.f32.mrb[36].mxu0 }
 0xd03   : > { %v3573_v9 = vadd.f32 %v1460_v11, %v1417_v58  ;;  %v2532_v4 = vpop.f32.mrb[37].mxu0 }
 0xd04   : > { %v1420_v5 = vpop.f32.mrb[38].mxu0 }
 0xd05   : > { %v2533_v12 = vpop.f32.mrb[39].mxu0 }
 0xd0a   : > { %v1510_v15 = vpop.f32.mrb[40].mxu0 }
 0xd0b   : > { %v1516_v14 = vmul.f32 0.17677669, %v1510_v15  ;;  %v2546_v60 = vpop.f32.mrb[41].mxu0 }
 0xd0c   : > { %v1513_v17 = vpop.f32.mrb[42].mxu0 }
 0xd0d   : > { %v2547_v3 = vpop.f32.mrb[43].mxu0  ;;  %v1517_v13 = vsel %vm534_vm2, %v1516_v14, -inf }
 0xd0e   : > { %1518 = vmax.xlane.f32.xlu0 %v1517_v13 }
 0xd24   : > { %1529 = vrot.lane.b32.xlu0 %v3525_v57, %s2893_s7 }
 0xd28   : > { %1622 = vrot.lane.b32.xlu0 %v3483_v10, %s2894_s9 }
 0xd9b   : > { %v1519_v2 = vpop.xlane.xlu0 %1518 }
 0xd9c   : > { %v1520_v18 = vsub.f32 %v1516_v14, %v1519_v2 }
 0xd9e   : > { %v1521_v19 = vmul.f32 1.442695, %v1520_v18 }
 0xd9f   : > { %v1530_v1 = vpop.permute.xlu0 %1529 }
 0xda0   : > { %2673 = vpow2.f32 %v1521_v19  ;;  %v1535_v20 = vsel %vm550_vm3, %v1530_v1, 0 }
 0xda1   : > { %2549 = vmatpush3.bf16.msra.mxu1 %v1535_v20 }
 0xda2   : > { %2562 = vmatprep.subr.bf16.mxu1 %v3862_v61 }
 0xda3   : > { %v1623_v4 = vpop.permute.xlu0 %1622 }
 0xdaa   : > { %v2674_v52 = vpop.eup %2673 }
 0xdab   : > { %v1523_v0 = vsel %vm534_vm2, %v2674_v52, 0.0 }
 0xdac   : > { %1524 = vadd.xlane.f32.xlu1 %v1523_v0 }
 0xdbd   : > { %1624 = vrot.lane.b32.xlu1 %v3479_v8, %s2894_s9 }
 0xe39   : > { %v1525_v11 = vpop.xlane.xlu1 %1524 }
 0xe3a   : > { %2675 = vrcp.f32 %v1525_v11 }
 0xe3d   : > { %v1625_v50 = vpop.permute.xlu1 %1624 }
 0xe3e   : > { %v1630_v58 = vsel %vm486_vm1, %v1625_v50, 0 }
 0xe44   : > { %v2676_v10 = vpop.eup %2675 }
 0xe45   : > { %v1527_v54 = vmul.f32 %v2676_v10, %v2674_v52  ;;  %v3873_v52 = vld [vmem:[#allocation88_spill] sm:$0xff] }
 0xe46   : > { %v1778_v0 = vadd.f32 %v3873_v52, %v3544_v16 }
 0xe47   : > { %v1528_v55 = vpack.c.bf16 %v1527_v54, %v1527_v54 }
 0xe48   : > { %v3607_v10 = vadd.f32 %v2871_v49, %v1778_v0 }
 0xe49   : > { %2551 = vmatmul.mubr.msk.bf16.vlgmr.msra.gmra.mrb[40].mxu1 %vm534_vm2, %v1528_v55 }
 0xe4a   : > { %2563 = vmatpush3.bf16.xpose.msra.mxu1 %v1630_v58  ;;  %2564 = vmatprep.mubr.msk.bf16.mxu1 %vm2891_vm0, %v3862_v61 }
 0xe4b   : > { %2574 = vmatprep.subr.bf16.mxu1 %v3862_v61 }
 0xe51   : > { %2565 = vmatmul.mubr.msk.bf16.vlgmr.msra.gmra.mrb[44].mxu1 %vm486_vm1, %v1623_v4 }
 0xe52   : > { %2575 = vmatpush3.bf16.msra.mxu1 %v3492_v7  ;;  %2578 = vmatprep.mubr.msk.bf16.mxu1 %vm2891_vm0, %v3862_v61 }
 0xe53   : > { %2576 = vmatprep.subr.bf16.mxu1 %v3862_v61 }
 0xe56   : > { %2577 = vmatpush3.bf16.msra.mxu1 %v3497_v6 }
 0xf1c   : > { %v1571_v8 = vpop.f32.mrb[40].mxu1 }
 0xf1d   : > { %v1577_v5 = vpack.c.bf16 %v1571_v8, %v1571_v8  ;;  %v2552_v12 = vpop.f32.mrb[41].mxu1 }
 0xf1e   : > { %v1574_v15 = vpop.f32.mrb[42].mxu1 }
 0xf1f   : > { %v2553_v14 = vpop.f32.mrb[43].mxu1  ;;  %2559 = vmatmul.mubr.msk.bf16.vlgmr.msra.gmra.mrb[44].mxu0 %vm486_vm1, %v1577_v5 }
 0xf20   : > { %2570 = vmatprep.mubr.msk.bf16.mxu0 %vm2891_vm0, %v3862_v61 }
 0xf24   : > { %v1666_v60 = vpop.f32.mrb[44].mxu1 }
 0xf25   : > { %v1672_v17 = vmul.f32 0.17677669, %v1666_v60  ;;  %v2566_v7 = vpop.f32.mrb[45].mxu1 }
 0xf26   : > { %v1669_v3 = vpop.f32.mrb[46].mxu1 }
 0xf27   : > { %v2567_v13 = vpop.f32.mrb[47].mxu1  ;;  %v1673_v2 = vsel %vm534_vm2, %v1672_v17, -inf }
 0xf28   : > { %1674 = vmax.xlane.f32.xlu0 %v1673_v2 }
 0xf3e   : > { %1685 = vrot.lane.b32.xlu0 %v3525_v57, %s2894_s9  ;;  %v1791_v57 = vmul.f32 %v3607_v10, %v3607_v10 }
 0xfb5   : > { %v1675_v6 = vpop.xlane.xlu0 %1674 }
 0xfb6   : > { %v1676_v18 = vsub.f32 %v1672_v17, %v1675_v6 }
 0xfb8   : > { %v1677_v19 = vmul.f32 1.442695, %v1676_v18 }
 0xfb9   : > { %v1686_v1 = vpop.permute.xlu0 %1685 }
 0xfba   : > { %2677 = vpow2.f32 %v1677_v19  ;;  %v1691_v20 = vsel %vm550_vm3, %v1686_v1, 0  ;;  %v3874_v1 = vmov 0  }
 0xfbb   : > { %2569 = vmatpush3.bf16.msra.mxu0 %v1691_v20 }
 0xfc4   : > { %v2678_v61 = vpop.eup %2677 }
 0xfc5   : > { %v1679_v11 = vsel %vm534_vm2, %v2678_v61, 0.0 }
 0xfc6   : > { %1680 = vadd.xlane.f32.xlu1 %v1679_v11 }
 0xfca   : > { %1782 = vadd.xlane.f32.xlu1 %v3607_v10 }
 0xfce   : > { %1792 = vadd.xlane.f32.xlu1 %v1791_v57 }
 0xff2   : > { %v1615_v54 = vpop.f32.mrb[44].mxu0 }
 0xff3   : > { %v1621_v50 = vadd.f32 %v1615_v54, %v3573_v9  ;;  %v2560_v55 = vpop.f32.mrb[45].mxu0 }
 0xff4   : > { %v1618_v58 = vpop.f32.mrb[46].mxu0 }
 0xff5   : > { %v2561_v4 = vpop.f32.mrb[47].mxu0 }
0x1053   : > { %v1681_v8 = vpop.xlane.xlu1 %1680 }
0x1054   : > { %2679 = vrcp.f32 %v1681_v8 }
0x1057   : > { %v1783_v16 = vpop.xlane.xlu1 %1782 }
0x1058   : > { %v1784_v5 = vrot.slane %v1783_v16, 4 }
0x105a   : > { %v1785_v12 = vadd.f32 %v1784_v5, %v1783_v16 }
0x105b   : > { %v1793_v15 = vpop.xlane.xlu1 %1792 }
0x105c   : > { %v1786_v49 = vrot.slane %v1785_v12, 2  ;;  %v1794_v14 = vrot.slane %v1793_v15, 4 }
0x105e   : > { %v2680_v60 = vpop.eup %2679  ;;  %v1795_v17 = vadd.f32 %v1794_v14, %v1793_v15  ;;  %v1787_v7 = vadd.f32 %v1786_v49, %v1785_v12 }
0x105f   : > { %v1683_v3 = vmul.f32 %v2680_v60, %v2678_v61  ;;  %v3875_v60 = vld [vmem:[#allocation41_spill] sm:$0xff] }
0x1060   : > { %v1796_v13 = vrot.slane %v1795_v17, 2  ;;  %v1788_v2 = vrot.slane %v1787_v7, 1 }
0x1061   : > { %v1684_v6 = vpack.c.bf16 %v1683_v3, %v1683_v3  ;;  %v3877_v3 = vld [vmem:[#allocation43_spill] sm:$0xff] }
0x1062   : > { %v1789_v18 = vadd.f32 %v1788_v2, %v1787_v7  ;;  %v1797_v9 = vadd.f32 %v1796_v13, %v1795_v17  ;;  %v3876_v17 = vld [vmem:[#allocation40_spill] sm:$0xff]  ;;  %v3878_v13 = vld [vmem:[#allocation42_spill] sm:$0xff] }
0x1063   : > { %2571 = vmatmul.mubr.msk.bf16.vlgmr.msra.gmra.mrb[48].mxu0 %vm534_vm2, %v1684_v6  ;;  %v2284_v7 = vcombine.high %v3876_v17, %v3875_v60  ;;  %v2286_v2 = vcombine.high %v3878_v13, %v3877_v3  ;;  %v3879_v6 = vld [vmem:[#allocation45_spill] sm:$0xff] }
0x1064   : > { %2582 = vpush %v1789_v18  ;;  %v1798_v19 = vrot.slane %v1797_v9, 1  ;;  %1965 = vmatprep.mubr.bf16.mxu0 %v3874_v1  ;;  %v3880_v18 = vld [vmem:[#allocation44_spill] sm:$0xff]  ;;  %v3881_v1 = vld [vmem:[#allocation47_spill] sm:$0xff] }
0x1065   : > { %1933 = vmatprep.subr.bf16.mxu0 %v2284_v7 }
0x1066   : > { %v1799_v20 = vadd.f32 %v1798_v19, %v1797_v9  ;;  %v2288_v9 = vcombine.high %v3880_v18, %v3879_v6  ;;  %v2287_v19 = vcombine.low %v3880_v18, %v3879_v6  ;;  %v3892_v6 = vld [vmem:[#allocation72_spill] sm:$0xff] }
0x1068   : > { %2584 = vpush %v1799_v20  ;;  %v3882_v20 = vld [vmem:[#allocation46_spill] sm:$0xff] }
0x1095   : > { %s2583_s17 = spop %2582 }
0x1096   : > { %s3615_s18 = smul.f32 0.0009765625, %s2583_s17 }
0x1098   : > { %s1807_s19 = smul.f32 %s3615_s18, %s3615_s18 }
0x1099   : > { %s2585_s2 = spop %2584 }
0x109a   : > { %s1806_s12 = smul.f32 0.0009765625, %s2585_s2 }
0x109c   : > { %s1808_s21 = ssub.f32 %s1806_s12, %s1807_s19 }
0x109e   : > { %s1811_s22 = sadd.f32 1e-05, %s1808_s21  ;;  %s2895_s21 = smov (%p264_p6), [#allocation13]  }
0x10a0   : > { %v1812_v61 = vstv %s1811_s22  ;;  %s2199_s22 = sshll.u32 (%p264_p6), %s2895_s21, 4  ;;  %s2200_s22 = int_to_ptr.vmem [resolvable:$true] %s2199_s22 }
0x10a1   : > { %2681 = vrsqrt.f32 %v1812_v61  ;;  %v2290_v61 = vcombine.high %v3882_v20, %v3881_v1  ;;  %p2826_p8 = scmp.lt.s32.totalorder (%p264_p6), %s2200_s22, %s2200_s22 }
0x10ab   : > { %v2682_v0 = vpop.eup %2681 }
0x10ac   : > { %2586 = vpush %v2682_v0  ;;  %v2289_v0 = vcombine.low %v3882_v20, %v3881_v1 }
0x10dd   : > { %s2587_s23 = spop %2586 }
0x1136   : > { %v1727_v11 = vpop.f32.mrb[48].mxu0 }
0x1137   : > { %v1733_v57 = vpack.c.bf16 %v1727_v11, %v1727_v11  ;;  %v2572_v54 = vpop.f32.mrb[49].mxu0  ;;  %v3883_v11 = vld [vmem:[#allocation49_spill] sm:$0xff] }
0x1138   : > { %v1730_v55 = vpop.f32.mrb[50].mxu0 }
0x1139   : > { %v2573_v58 = vpop.f32.mrb[51].mxu0  ;;  %2579 = vmatmul.mubr.msk.bf16.vlgmr.msra.gmra.mrb[48].mxu1 %vm486_vm1, %v1733_v57  ;;  %v3884_v57 = vld [vmem:[#allocation48_spill] sm:$0xff] }
0x113a   : > { %v2292_v54 = vcombine.high %v3884_v57, %v3883_v11  ;;  %v2291_v55 = vcombine.low %v3884_v57, %v3883_v11  ;;  %v3885_v58 = vld [vmem:[#allocation51_spill] sm:$0xff]  ;;  %v3894_v11 = vld [vmem:[#allocation56_spill] sm:$0xff] }
0x120c   : > { %v1771_v4 = vpop.f32.mrb[48].mxu1 }
0x120d   : > { %v1777_v8 = vadd.f32 %v1771_v4, %v1621_v50  ;;  %v2580_v16 = vpop.f32.mrb[49].mxu1  ;;  %v2283_v50 = vcombine.low %v3876_v17, %v3875_v60  ;;  %v3886_v4 = vld [vmem:[#allocation50_spill] sm:$0xff] }
0x120e   : > { %v1774_v5 = vpop.f32.mrb[50].mxu1  ;;  %v2293_v16 = vcombine.low %v3886_v4, %v3885_v58 }
0x120f   : > { %v1779_v12 = vadd.f32 %v3873_v52, %v1777_v8  ;;  %v2581_v15 = vpop.f32.mrb[51].mxu1  ;;  %1934 = vmatpush1.bf16.msra.mxu0 %v2283_v50  ;;  %v2294_v8 = vcombine.high %v3886_v4, %v3885_v58  ;;  %v3887_v5 = vld [vmem:[#allocation53_spill] sm:$0xff] }
0x1210   : > { %1935 = vmatprep.subr.bf16.mxu0 %v2286_v2 }
0x1211   : > { %v3622_v49 = vadd.f32 %v2867_v59, %v1779_v12  ;;  %v2285_v59 = vcombine.low %v3878_v13, %v3877_v3  ;;  %v3888_v12 = vld [vmem:[#allocation52_spill] sm:$0xff] }
0x1212   : > { %v2296_v15 = vcombine.high %v3888_v12, %v3887_v5 }
0x1213   : > { %1817 = vadd.xlane.f32.xlu0 %v3622_v49  ;;  %v1826_v14 = vmul.f32 %v3622_v49, %v3622_v49  ;;  %1936 = vmatpush1.bf16.msra.mxu0 %v2285_v59 }
0x1214   : > { %1937 = vmatprep.subr.bf16.mxu0 %v2288_v9 }
0x1215   : > { %1827 = vadd.xlane.f32.xlu1 %v1826_v14  ;;  %v2295_v14 = vcombine.low %v3888_v12, %v3887_v5  ;;  %v3891_v5 = vld [vmem:[#allocation73_spill] sm:$0xff]  ;;  %v3896_v12 = vld [vmem:[#allocation74_spill] sm:$0xff] }
0x1217   : > { %1938 = vmatpush1.bf16.msra.mxu0 %v2287_v19 }
0x1218   : > { %1939 = vmatprep.subr.bf16.mxu0 %v2290_v61 }
0x121b   : > { %1940 = vmatpush1.bf16.msra.mxu0 %v2289_v0  ;;  %v3889_v0 = vld [vmem:[#allocation55_spill] sm:$0xff] }
0x121c   : > { %1941 = vmatprep.subr.bf16.mxu0 %v2292_v54  ;;  %v3890_v54 = vld [vmem:[#allocation54_spill] sm:$0xff] }
0x121f   : > { %1942 = vmatpush1.bf16.msra.mxu0 %v2291_v55  ;;  %v2298_v55 = vcombine.high %v3890_v54, %v3889_v0 }
0x1220   : > { %1943 = vmatprep.subr.bf16.mxu0 %v2294_v8  ;;  %v2297_v8 = vcombine.low %v3890_v54, %v3889_v0 }
0x1223   : > { %1944 = vmatpush1.bf16.msra.mxu0 %v2293_v16 }
0x1224   : > { %1945 = vmatprep.subr.bf16.mxu0 %v2296_v15 }
0x1227   : > { %1946 = vmatpush1.bf16.msra.mxu0 %v2295_v14 }
0x1228   : > { %1947 = vmatprep.subr.bf16.mxu0 %v2298_v55 }
0x122b   : > { %1948 = vmatpush1.bf16.msra.mxu0 %v2297_v8 }
0x12a0   : > { %v1818_v7 = vpop.xlane.xlu0 %1817 }
0x12a1   : > { %v1819_v50 = vrot.slane %v1818_v7, 4 }
0x12a2   : > { %v1828_v2 = vpop.xlane.xlu1 %1827 }
0x12a3   : > { %v1820_v59 = vadd.f32 %v1819_v50, %v1818_v7  ;;  %v1829_v9 = vrot.slane %v1828_v2, 4  ;;  %v2307_v7 = vcombine.low %v3892_v6, %v3891_v5  ;;  %v3893_v50 = vld [vmem:[#allocation57_spill] sm:$0xff]  ;;  %v3902_v5 = vld [vmem:[#allocation60_spill] sm:$0xff] }
0x12a4   : > { %v3901_v6 = vld [vmem:[#allocation61_spill] sm:$0xff] }
0x12a5   : > { %v1821_v19 = vrot.slane %v1820_v59, 2  ;;  %v1830_v61 = vadd.f32 %v1829_v9, %v1828_v2  ;;  %v2299_v2 = vcombine.low %v3894_v11, %v3893_v50  ;;  %v3895_v9 = vld [vmem:[#allocation75_spill] sm:$0xff]  ;;  %2380 = vmatprep.subr.bf16.mxu1 %v2307_v7  ;;  %v2301_v8 = vcombine.low %v3902_v5, %v3901_v6  ;;  %v3907_v7 = vld [vmem:[#allocation81_spill] sm:$0xff]  ;;  %v3908_v50 = vld [vmem:[#allocation80_spill] sm:$0xff] }
0x12a6   : > { %v2308_v13 = vcombine.low %v3896_v12, %v3895_v9  ;;  %v3903_v11 = vld [vmem:[#allocation79_spill] sm:$0xff]  ;;  %v1815_v5 = vstv %s2587_s23  ;;  %s2821_s23 = scalar_lea.vmem (%p264_p6), %s2200_s22, 256 }
0x12a7   : > { %v1822_v1 = vadd.f32 %v1821_v19, %v1820_v59  ;;  %v1831_v16 = vrot.slane %v1830_v61, 2  ;;  %2381 = vmatpush3.bf16.msra.mxu1 %v2299_v2  ;;  %v3897_v59 = vld [vmem:[#allocation59_spill] sm:$0xff]  ;;  %v3898_v19 = vld [vmem:[#allocation58_spill] sm:$0xff]  ;;  %v3910_v2 = vld [vmem:[#allocation64_spill] sm:$0xff]  ;;  %p2822_p7 = scmp.ne.s32.totalorder (%p264_p6), %s2200_s22, %s2821_s23  ;;  %p2827_p9 = scmp.lt.s32.totalorder (%p264_p6), %s2821_s23, %s2821_s23 }
0x12a8   : > { %v2300_v55 = vcombine.low %v3898_v19, %v3897_v59  ;;  %2382 = vmatprep.subr.bf16.mxu1 %v2308_v13  ;;  %v3909_v13 = vld [vmem:[#allocation65_spill] sm:$0xff]  ;;  %v3911_v59 = vld [vmem:[#allocation83_spill] sm:$0xff]  ;;  %v3912_v19 = vld [vmem:[#allocation82_spill] sm:$0xff] }
0x12a9   : > { %v1823_v3 = vrot.slane %v1822_v1, 1  ;;  %v1832_v15 = vadd.f32 %v1831_v16, %v1830_v61  ;;  %v3904_v16 = vld [vmem:[#allocation78_spill] sm:$0xff]  ;;  %v2303_v9 = vcombine.low %v3910_v2, %v3909_v13  ;;  %v3916_v13 = vld [vmem:[#allocation84_spill] sm:$0xff]  ;;  %p2828_p10 = por (%p264_p6), %p2827_p9, %p2826_p8 }
0x12aa   : > { %v2310_v12 = vcombine.low %v3904_v16, %v3903_v11 }
0x12ab   : > { %v1824_v14 = vadd.f32 %v1823_v3, %v1822_v1  ;;  %v1833_v4 = vrot.slane %v1832_v15, 1  ;;  %v3899_v3 = vld [vmem:[#allocation77_spill] sm:$0xff]  ;;  %v3900_v1 = vld [vmem:[#allocation76_spill] sm:$0xff]  ;;  %2383 = vmatpush3.bf16.msra.mxu1 %v2300_v55  ;;  %v2312_v55 = vcombine.low %v3912_v19, %v3911_v59  ;;  %p2829_p11 = pnand (%p264_p6), %p2828_p10, %p2822_p7 }
0x12ac   : > { %v2309_v61 = vcombine.low %v3900_v1, %v3899_v3  ;;  %v3918_v59 = vld [vmem:[#allocation68_spill] sm:$0xff] }
0x12ad   : > { %2588 = vpush %v1824_v14  ;;  %v1834_v17 = vadd.f32 %v1833_v4, %v1832_v15  ;;  %v3905_v4 = vld [vmem:[#allocation63_spill] sm:$0xff]  ;;  %v3906_v15 = vld [vmem:[#allocation62_spill] sm:$0xff] }
0x12ae   : > { %2384 = vmatprep.subr.bf16.mxu1 %v2309_v61  ;;  %v2302_v14 = vcombine.low %v3906_v15, %v3905_v4  ;;  %v1809_v61 = vstv %s3615_s18 }
0x12af   : > { %2590 = vpush %v1834_v17  ;;  %2385 = vmatpush3.bf16.msra.mxu1 %v2301_v8  ;;  %v2311_v17 = vcombine.low %v3908_v50, %v3907_v7  ;;  %v1810_v8 = vsub.f32 %v3607_v10, %v1809_v61  ;;  %v3914_v7 = vld [vmem:[#allocation66_spill] sm:$0xff]  ;;  %v3921_v61 = vld [vmem:[#allocation71_spill] sm:$0xff] }
0x12b0   : > { %2386 = vmatprep.subr.bf16.mxu1 %v2310_v12 }
0x12b1   : > { %v1816_v12 = vmul.f32 %v1815_v5, %v1810_v8 }
0x12b3   : > { %2387 = vmatpush3.bf16.msra.mxu1 %v2302_v14  ;;  %v3913_v14 = vld [vmem:[#allocation67_spill] sm:$0xff] }
0x12b4   : > { %2388 = vmatprep.subr.bf16.mxu1 %v2311_v17  ;;  %v2304_v50 = vcombine.low %v3914_v7, %v3913_v14  ;;  %v3915_v17 = vld [vmem:[#allocation85_spill] sm:$0xff] }
0x12b5   : > { %v2313_v2 = vcombine.low %v3916_v13, %v3915_v17 }
0x12b7   : > { %2389 = vmatpush3.bf16.msra.mxu1 %v2303_v9  ;;  %v3917_v9 = vld [vmem:[#allocation69_spill] sm:$0xff] }
0x12b8   : > { %2390 = vmatprep.subr.bf16.mxu1 %v2312_v55  ;;  %v2305_v19 = vcombine.low %v3918_v59, %v3917_v9  ;;  %v3919_v55 = vld [vmem:[#allocation87_spill] sm:$0xff] }
0x12bb   : > { %2391 = vmatpush3.bf16.msra.mxu1 %v2304_v50 }
0x12bc   : > { %2392 = vmatprep.subr.bf16.mxu1 %v2313_v2 }
0x12bf   : > { %2393 = vmatpush3.bf16.msra.mxu1 %v2305_v19 }
0x12de   : > { %s2589_s0 = spop %2588 }
0x12df   : > { %s1838_s20 = smul.f32 0.0009765625, %s2589_s0 }
0x12e0   : > { %s2591_s24 = spop %2590 }
0x12e1   : > { %s1842_s25 = smul.f32 %s1838_s20, %s1838_s20  ;;  %v1844_v6 = vstv %s1838_s20 }
0x12e2   : > { %s1841_s26 = smul.f32 0.0009765625, %s2591_s24  ;;  %v1845_v11 = vsub.f32 %v3622_v49, %v1844_v6  ;;  %v3922_v6 = vld [vmem:[#allocation70_spill] sm:$0xff] }
0x12e3   : > { %v2306_v5 = vcombine.low %v3922_v6, %v3921_v61 }
0x12e4   : > { %s1843_s28 = ssub.f32 %s1841_s26, %s1842_s25 }
0x12e6   : > { %s1846_s6 = sadd.f32 1e-05, %s1843_s28 }
0x12e8   : > { %v1847_v3 = vstv %s1846_s6 }
0x12e9   : > { %2683 = vrsqrt.f32 %v1847_v3  ;;  %v3920_v3 = vld [vmem:[#allocation86_spill] sm:$0xff] }
0x12f3   : > { %v2684_v1 = vpop.eup %2683 }
0x12f4   : > { %2592 = vpush %v2684_v1  ;;  %v2314_v1 = vcombine.low %v3920_v3, %v3919_v55 }
0x12f6   : > { %2394 = vmatprep.subr.bf16.mxu1 %v2314_v1 }
0x12f7   : > { %2395 = vmatpush3.bf16.msra.mxu1 %v2306_v5 }
0x1325   : > { %s2593_s27 = spop %2592 }
0x1326   : > { %v1850_v16 = vstv %s2593_s27 }
0x1327   : > { %v1851_v4 = vmul.f32 %v1850_v16, %v1845_v11 }
0x1329   : > { %v1852_v15 = vpack.c.bf16 %v1851_v4, %v1816_v12 }
0x132b   : > { %1966 = vmatmul.mubr.bf16.vlgmr.msra.gmra.mrb[52].mxu0 %v1852_v15 }
0x13fe   : > { %v1967_v8 = vpop.f32.mrb[52].mxu0 }
0x13ff   : > { %v1968_v11 = vadd.f32 %v1967_v8, %v3258_v51  ;;  %v1969_v16 = vpop.f32.mrb[53].mxu0 }
0x1400   : > { %v1970_v12 = vadd.f32 %v1969_v16, %v3265_v56  ;;  %v1971_v4 = vpop.f32.mrb[54].mxu0 }
0x1401   : > { %v1972_v15 = vadd.f32 %v1971_v4, %v3258_v51  ;;  %v1973_v14 = vpop.f32.mrb[55].mxu0  ;;  %v1976_v50 = vmax.f32 %v1968_v11, 0.0 }
0x1402   : > { %v1974_v7 = vadd.f32 %v1973_v14, %v3265_v56  ;;  %v1977_v13 = vmax.f32 %v1970_v12, 0.0 }
0x1403   : > { %v1978_v17 = vmax.f32 %v1972_v15, 0.0 }
0x1404   : > { %v1979_v2 = vmax.f32 %v1974_v7, 0.0 }
0x1405   : > { %v1980_v9 = vpack.c.bf16 %v1978_v17, %v1976_v50 }
0x1406   : > { %v1981_v59 = vpack.c.bf16 %v1979_v2, %v1977_v13 }
0x1408   : > { %2110 = vmatprep.mubr.bf16.mxu1 %v1981_v59 }
0x1409   : > { %2111 = vmatmul.mubr.bf16.vlgmr.msra.gmra.mrb[52].mxu1 %v1980_v9 }
0x14dc   : > { %v2396_v19 = vpop.f32.mrb[52].mxu1 }
0x14dd   : > { %v2397_v55 = vpop.f32.mrb[53].mxu1 }
0x14de   : > { %v2398_v3 = vadd.f32 %v2397_v55, %v2396_v19  ;;  %v2399_v1 = vpop.f32.mrb[54].mxu1 }
0x14df   : > { %v2400_v61 = vpop.f32.mrb[55].mxu1 }
0x14e0   : > { %v2113_v6 = vadd.f32 %v2398_v3, %v3263_v62  ;;  %v2401_v5 = vadd.f32 %v2400_v61, %v2399_v1 }
0x14e2   : > { %v2119_v8 = vadd.f32 %v2113_v6, %v3607_v10  ;;  %v2116_v11 = vadd.f32 %v2401_v5, %v3263_v62 }
0x14e4   : > { %2121 = vadd.xlane.f32.xlu1 %v2119_v8  ;;  %v2130_v16 = vmul.f32 %v2119_v8, %v2119_v8  ;;  %v3702_v12 = vadd.f32 %v2116_v11, %v3622_v49 }
0x14e6   : > { %v2165_v4 = vmul.f32 %v3702_v12, %v3702_v12 }
0x14e8   : > { %2131 = vadd.xlane.f32.xlu1 %v2130_v16 }
0x14ec   : > { %2156 = vadd.xlane.f32.xlu1 %v3702_v12 }
0x14f0   : > { %2166 = vadd.xlane.f32.xlu1 %v2165_v4 }
0x1571   : > { %v2122_v15 = vpop.xlane.xlu1 %2121 }
0x1572   : > { %v2123_v14 = vrot.slane %v2122_v15, 4 }
0x1574   : > { %v2124_v7 = vadd.f32 %v2123_v14, %v2122_v15 }
0x1575   : > { %v2132_v50 = vpop.xlane.xlu1 %2131 }
0x1576   : > { %v2125_v17 = vrot.slane %v2124_v7, 2  ;;  %v2133_v10 = vrot.slane %v2132_v50, 4 }
0x1578   : > { %v2134_v13 = vadd.f32 %v2133_v10, %v2132_v50  ;;  %v2126_v2 = vadd.f32 %v2125_v17, %v2124_v7 }
0x1579   : > { %v2157_v1 = vpop.xlane.xlu1 %2156 }
0x157a   : > { %v2135_v9 = vrot.slane %v2134_v13, 2  ;;  %v2127_v59 = vrot.slane %v2126_v2, 1  ;;  %v2158_v6 = vrot.slane %v2157_v1, 4 }
0x157c   : > { %v2128_v19 = vadd.f32 %v2127_v59, %v2126_v2  ;;  %v2136_v55 = vadd.f32 %v2135_v9, %v2134_v13  ;;  %v2159_v11 = vadd.f32 %v2158_v6, %v2157_v1 }
0x157d   : > { %v2167_v61 = vpop.xlane.xlu1 %2166 }
0x157e   : > { %2594 = vpush %v2128_v19  ;;  %v2137_v49 = vrot.slane %v2136_v55, 1  ;;  %v2168_v5 = vrot.slane %v2167_v61, 4  ;;  %v2160_v4 = vrot.slane %v2159_v11, 2 }
0x1580   : > { %v2138_v3 = vadd.f32 %v2137_v49, %v2136_v55  ;;  %v2169_v16 = vadd.f32 %v2168_v5, %v2167_v61  ;;  %v2161_v7 = vadd.f32 %v2160_v4, %v2159_v11 }
0x1582   : > { %2596 = vpush %v2138_v3  ;;  %v2170_v15 = vrot.slane %v2169_v16, 2  ;;  %v2162_v17 = vrot.slane %v2161_v7, 1 }
0x1584   : > { %v2171_v50 = vadd.f32 %v2170_v15, %v2169_v16  ;;  %v2163_v2 = vadd.f32 %v2162_v17, %v2161_v7 }
0x1586   : > { %v2172_v10 = vrot.slane %v2171_v50, 1 }
0x1588   : > { %v2173_v9 = vadd.f32 %v2172_v10, %v2171_v50 }
0x15af   : > { %s2595_s8 = spop %2594 }
0x15b0   : > { %s2142_s1 = smul.f32 0.0009765625, %s2595_s8 }
0x15b2   : > { %s2146_s14 = smul.f32 %s2142_s1, %s2142_s1  ;;  %v2148_v59 = vstv %s2142_s1 }
0x15b3   : > { %s2597_s29 = spop %2596  ;;  %v2149_v19 = vsub.f32 %v2119_v8, %v2148_v59 }
0x15b4   : > { %s2145_s30 = smul.f32 0.0009765625, %s2597_s29 }
0x15b6   : > { %s2147_s11 = ssub.f32 %s2145_s30, %s2146_s14 }
0x15b8   : > { %s2150_s13 = sadd.f32 1e-05, %s2147_s11 }
0x15ba   : > { %v2151_v14 = vstv %s2150_s13 }
0x15bb   : > { %2685 = vrsqrt.f32 %v2151_v14 }
0x15c5   : > { %v2686_v13 = vpop.eup %2685 }
0x15c6   : > { %2598 = vpush %v2686_v13 }
0x15c7   : > { %2600 = vpush %v2163_v2 }
0x15c8   : > { %2602 = vpush %v2173_v9 }
0x15f7   : > { %s2599_s15 = spop %2598 }
0x15f8   : > { %v2154_v55 = vstv %s2599_s15  ;;  %s2601_s5 = spop %2600 }
0x15f9   : > { %v2155_v3 = vmul.f32 %v2154_v55, %v2149_v19   ;;  %s2177_s7 = smul.f32 0.0009765625, %s2601_s5  ;;  %s2603_s9 = spop %2602 }
0x15fa   : > { %s2180_s17 = smul.f32 0.0009765625, %s2603_s9 }
0x15fb   : > { %s2181_s18 = smul.f32 %s2177_s7, %s2177_s7  ;;  %v2183_v61 = vstv %s2177_s7  ;;  %2191 = vst [vmem:[#allocation13] sm:$0xff] (%p264_p6), %v2155_v3 }
0x15fc   : > { %v2184_v6 = vsub.f32 %v3702_v12, %v2183_v61 }
0x15fd   : > { %s2182_s19 = ssub.f32 %s2180_s17, %s2181_s18 }
0x15ff   : > { %s2185_s2 = sadd.f32 1e-05, %s2182_s19 }
0x1601   : > { %v2186_v49 = vstv %s2185_s2 }
0x1602   : > { %2687 = vrsqrt.f32 %v2186_v49  ;;  %v3924_v49 = vmov %v2155_v3 }
0x160c   : > { %v2688_v1 = vpop.eup %2687 }
0x160d   : > { %2604 = vpush %v2688_v1 }
0x163c   :  { %266 = sbr.rel (!%p264_p6) target bundleno = 159 (0x9f), region = 93 }
0x163e   : > { %s2605_s12 = spop %2604 }
0x163f   : > { %v2189_v5 = vstv %s2605_s12 }
0x1640   : > { %v2190_v8 = vmul.f32 %v2189_v5, %v2184_v6  }
0x1642   : > { %v3923_v59 = vmov %v2190_v8  ;;  %2193 = vst [vmem:[#allocation13 + $0x8] sm:$0xff] (%p264_p6), %v2190_v8 }
0x1643   :  { %2832 = shalt.err (!%p2829_p11)
}
0x1644   :  { %s2833_s24 = scalar_lea.hbm %s3740_s10, 256 }
0x1645   :  { %p2834_p12 = scmp.ne.s32.totalorder %s3740_s10, %s2833_s24  ;;  %p2837_p13 = scmp.lt.u32.totalorder %s2833_s24, %s3740_s10 }
0x1647   :  { %p2839_p0 = pnand %p2837_p13, %p2834_p12 }
0x1649   :  { %2842 = shalt.err (!%p2839_p0)
}
0x164a   :  { %2205 = dma.vmem_to_hbm [thread:$0]  %s2200_s22, 256, %s3740_s10, [#allocation4], %s2882_s4, %s2882_s4, %s2883_s16  }
0x164b   :  { %2863 = dma.done.wait [#allocation4], 256  }
0x164c   :  { %2864 = vsyncadd [#allocation4], 4294967040 }
0x164d   :  { %2209 = vsyncpa [#allocation3], 1 }
0x164e   :  { %2210 = vsyncpa [#allocation6], 1 }
0x164f   :  { %2211 = vsyncpa [#allocation9], 1 }
0x1650   :  { %2212 = vsyncpa [#allocation12], 1 }
0x1651   :  { %2213 = vsyncpa [#allocation4], 1 }

</bundles_post_ra>
